<compile_context>
chip_gen: v7x
topology: tpu7x:2x2x1
jax: 0.10.0
libtpu: 0.0.40
codegen_flags: <defaults>
</compile_context>

<pallas_src>
import math
import functools

import jax
import jax.numpy as jnp
from jax import lax
from jax.experimental import pallas as pl
from jax.experimental.pallas import tpu as pltpu


def _round_up(n, m):
    return ((n + m - 1) // m) * m


def _pick_time_chunk(T, max_chunk=32):
    """Largest divisor of T that is <= max_chunk (static Python int)."""
    tc = min(T, max_chunk)
    while T % tc:
        tc -= 1
    return tc


# ----------------------------------------------------------------------------
# Phase 1: serial recurrence.  One grid step == one time chunk of Tc steps.
#   h_t = x_t @ Wx_h + h_{t-1} @ Wh_h + b_h
# Outputs: hprev stream (hprev[t] = h_{t-1}, the hidden fed into step t) and
# the final hidden state (resident output block, written back once).
# ----------------------------------------------------------------------------
def _recurrence_kernel(x_ref, h0_ref, wxh_ref, whh_ref, bh_ref,
                       hprev_ref, hfin_ref, *, tc):
    c = pl.program_id(0)

    @pl.when(c == 0)
    def _():
        hfin_ref[...] = h0_ref[...]

    wxh = wxh_ref[...]
    whh = whh_ref[...]
    bh = bh_ref[...]

    def step(t, h_prev):
        # Record the hidden state *fed into* step t (needed by the i2o path).
        hprev_ref[t] = h_prev.astype(hprev_ref.dtype)
        x = x_ref[t]                                   # (B_pad, I_pad)
        h_new = (jnp.dot(x, wxh, preferred_element_type=jnp.float32)
                 + jnp.dot(h_prev, whh, preferred_element_type=jnp.float32)
                 + bh)
        return h_new

    h_last = lax.fori_loop(0, tc, step, hfin_ref[...], unroll=True)
    hfin_ref[...] = h_last.astype(hfin_ref.dtype)


# ----------------------------------------------------------------------------
# Phase 2: batched i2o projection + LogSoftmax over a whole time chunk.
#   logits_t = x_t @ Wx_o + h_{t-1} @ Wh_o + b_o ; out_t = log_softmax(logits)
# The (Tc, B_pad) dims are flattened so the MXU sees M = Tc * B_pad rows.
# Padded output lanes are pre-masked to -1e30 via the packed bias.
# ----------------------------------------------------------------------------
def _projection_kernel(x_ref, h_ref, wxo_ref, who_ref, bo_ref, out_ref):
    tc, b_pad, i_pad = x_ref.shape
    h_pad = h_ref.shape[-1]
    o_pad = out_ref.shape[-1]

    xb = x_ref[...].reshape(tc * b_pad, i_pad)
    hb = h_ref[...].reshape(tc * b_pad, h_pad)

    logits = (jnp.dot(xb, wxo_ref[...], preferred_element_type=jnp.float32)
              + jnp.dot(hb, who_ref[...], preferred_element_type=jnp.float32)
              + bo_ref[...])

    m = jnp.max(logits, axis=1, keepdims=True)
    shifted = logits - m
    lse = jnp.log(jnp.sum(jnp.exp(shifted), axis=1, keepdims=True))
    out = (shifted - lse).reshape(tc, b_pad, o_pad)
    out_ref[...] = out.astype(out_ref.dtype)


# ----------------------------------------------------------------------------
# Wrappers
# ----------------------------------------------------------------------------
@functools.partial(jax.jit, static_argnames=("output_size",))
def rnn_forward_sequence(x_seq, h0, w_x_h, w_h_h, b_h, w_x_o, w_h_o, b_o,
                         *, output_size):
    """Run the RNN cell over a whole sequence with two pallas_calls.

    x_seq: (T, B, I) f32, h0: (B, H) f32, packed params from pack_params().
    Returns (log_softmax outputs (T, B, O), final hidden (B, H)); identical to
    applying RNN.forward step-by-step.
    """
    T, B, I = x_seq.shape
    H = h0.shape[1]
    O = output_size

    I_pad = w_x_h.shape[0]
    H_pad = w_h_h.shape[0]
    O_pad = w_x_o.shape[1]
    B_pad = _round_up(max(B, 8), 8)
    tc = _pick_time_chunk(T)

    # Zero-pad activations to aligned tiles (sliced off after the calls).
    x_p = jnp.zeros((T, B_pad, I_pad), jnp.float32).at[:, :B, :I].set(x_seq)
    h0_p = jnp.zeros((B_pad, H_pad), jnp.float32).at[:B, :H].set(h0)

    # ---- Phase 1: serial recurrence over time chunks --------------------
    hprev_p, hfin_p = pl.pallas_call(
        functools.partial(_recurrence_kernel, tc=tc),
        out_shape=(jax.ShapeDtypeStruct((T, B_pad, H_pad), jnp.float32),
                   jax.ShapeDtypeStruct((B_pad, H_pad), jnp.float32)),
        grid_spec=pltpu.PrefetchScalarGridSpec(
            num_scalar_prefetch=0,
            grid=(T // tc,),
            in_specs=[
                pl.BlockSpec((tc, B_pad, I_pad), lambda c: (c, 0, 0)),  # x chunk
                pl.BlockSpec((B_pad, H_pad), lambda c: (0, 0)),          # h0 (resident)
                pl.BlockSpec((I_pad, H_pad), lambda c: (0, 0)),          # Wx_h (resident)
                pl.BlockSpec((H_pad, H_pad), lambda c: (0, 0)),          # Wh_h (resident)
                pl.BlockSpec((1, H_pad), lambda c: (0, 0)),              # b_h (resident)
            ],
            out_specs=[
                pl.BlockSpec((tc, B_pad, H_pad), lambda c: (c, 0, 0)),   # h_{t-1} stream
                pl.BlockSpec((B_pad, H_pad), lambda c: (0, 0)),          # final hidden
            ],
        ),
        compiler_params=pltpu.CompilerParams(
            dimension_semantics=("arbitrary",)),   # sequential time dependence
    )(x_p, h0_p, w_x_h, w_h_h, b_h)

    # ---- Phase 2: batched i2o projection + log_softmax ------------------
    out_p = pl.pallas_call(
        _projection_kernel,
        out_shape=jax.ShapeDtypeStruct((T, B_pad, O_pad), jnp.float32),
        grid_spec=pltpu.PrefetchScalarGridSpec(
            num_scalar_prefetch=0,
            grid=(T // tc,),
            in_specs=[
                pl.BlockSpec((tc, B_pad, I_pad), lambda c: (c, 0, 0)),  # x chunk
                pl.BlockSpec((tc, B_pad, H_pad), lambda c: (c, 0, 0)),  # h_{t-1} chunk
                pl.BlockSpec((I_pad, O_pad), lambda c: (0, 0)),          # Wx_o (resident)
                pl.BlockSpec((H_pad, O_pad), lambda c: (0, 0)),          # Wh_o (resident)
                pl.BlockSpec((1, O_pad), lambda c: (0, 0)),              # b_o (resident, masked)
            ],
            out_specs=pl.BlockSpec((tc, B_pad, O_pad), lambda c: (c, 0, 0)),
        ),
        compiler_params=pltpu.CompilerParams(
            dimension_semantics=("parallel",)),    # independent per time chunk
    )(x_p, hprev_p, w_x_o, w_h_o, b_o)

    return out_p[:, :B, :O], hfin_p[:B, :H]


def rnn_step(x, hidden, *packed, output_size):
    """One RNN.forward(input, hidden) step -> (log_softmax output, new hidden)."""
    out_seq, new_hidden = rnn_forward_sequence(
        x[None], hidden, *packed, output_size=output_size)
    return out_seq[0], new_hidden


# ----------------------------------------------------------------------------
# Parameter init / packing
# ----------------------------------------------------------------------------
def init_params(key, input_size, hidden_size, output_size):
    """Deterministic init matching nn.Linear's U(-1/sqrt(fan_in), 1/sqrt(fan_in)).

    Stored transposed: w_*_t is (in_features, out_features) so math is x @ W.
    """
    fan_in = input_size + hidden_size
    bound = 1.0 / math.sqrt(fan_in)
    k1, k2, k3, k4 = jax.random.split(key, 4)
    w_i2h_t = jax.random.uniform(k1, (fan_in, hidden_size), jnp.float32, -bound, bound)
    b_i2h = jax.random.uniform(k2, (1, hidden_size), jnp.float32, -bound, bound)
    w_i2o_t = jax.random.uniform(k3, (fan_in, output_size), jnp.float32, -bound, bound)
    b_i2o = jax.random.uniform(k4, (1, output_size), jnp.float32, -bound, bound)
    return w_i2h_t, b_i2h, w_i2o_t, b_i2o


def pack_params(w_i2h_t, b_i2h, w_i2o_t, b_i2o,
                input_size, hidden_size, output_size):
    """Split the fused-Linear weights by x/h rows and by i2h/i2o columns,
    zero-padding feature dims to 128 lanes.

    The i2o bias carries the padded-lane mask (-1e30) so LogSoftmax over
    padded lanes is handled for free (padded weight columns are zero, so the
    pre-activation for those lanes is exactly the bias).
    """
    I, H, O = input_size, hidden_size, output_size
    I_pad = _round_up(I, 128)
    H_pad = _round_up(H, 128)
    O_pad = _round_up(O, 128)

    w_x_h = jnp.zeros((I_pad, H_pad), jnp.float32).at[:I, :H].set(w_i2h_t[:I])
    w_h_h = jnp.zeros((H_pad, H_pad), jnp.float32).at[:H, :H].set(w_i2h_t[I:])
    b_h = jnp.zeros((1, H_pad), jnp.float32).at[0, :H].set(b_i2h[0])

    w_x_o = jnp.zeros((I_pad, O_pad), jnp.float32).at[:I, :O].set(w_i2o_t[:I])
    w_h_o = jnp.zeros((H_pad, O_pad), jnp.float32).at[:H, :O].set(w_i2o_t[I:])
    b_o = jnp.full((1, O_pad), -1e30, jnp.float32).at[0, :O].set(b_i2o[0])

    return w_x_h, w_h_h, b_h, w_x_o, w_h_o, b_o


# ----------------------------------------------------------------------------
# Pure-JAX reference (mirrors RNN.forward)
# ----------------------------------------------------------------------------
def _reference_step(x, hidden, w_i2h_t, b_i2h, w_i2o_t, b_i2o):
    combined = jnp.concatenate([x, hidden], axis=1)
    new_hidden = combined @ w_i2h_t + b_i2h
    logits = combined @ w_i2o_t + b_i2o
    out = jax.nn.log_softmax(logits, axis=1)
    return out, new_hidden


if __name__ == "__main__":
    key = jax.random.PRNGKey(0)
    batch, input_size, hidden_size, output_size = 2, 16, 32, 8
    seq_len = 8

    kp, kx = jax.random.split(key)
    raw = init_params(kp, input_size, hidden_size, output_size)
    packed = pack_params(*raw, input_size, hidden_size, output_size)

    x_seq = jax.random.normal(kx, (seq_len, batch, input_size), jnp.float32)
    h0 = jnp.zeros((batch, hidden_size), jnp.float32)   # like RNN.initHidden()

    # Whole sequence: recurrence kernel + batched projection kernel.
    out_seq, h_final = rnn_forward_sequence(x_seq, h0, *packed,
                                            output_size=output_size)
    jax.block_until_ready((out_seq, h_final))

    # Single-step API (semantics of RNN.forward(input, hidden)).
    out_step, h_step = rnn_step(x_seq[0], h0, *packed, output_size=output_size)
    jax.block_until_ready((out_step, h_step))

    # Pure-JAX reference, unrolled step by step.
    ref_h = h0
    ref_outs = []
    for t in range(seq_len):
        o, ref_h = _reference_step(x_seq[t], ref_h, *raw)
        ref_outs.append(o)
    ref_out_seq = jnp.stack(ref_outs, axis=0)
    ref_out0, ref_h0_next = _reference_step(x_seq[0], h0, *raw)

    assert jnp.allclose(out_seq, ref_out_seq, atol=1e-4, rtol=1e-4)
    assert jnp.allclose(h_final, ref_h, atol=1e-4, rtol=1e-4)
    assert jnp.allclose(out_step, ref_out0, atol=1e-4, rtol=1e-4)
    assert jnp.allclose(h_step, ref_h0_next, atol=1e-4, rtol=1e-4)

    print("KERNEL_OK")
</pallas_src>

<mosaic_0001>
module attributes {stable_mosaic.version = 11 : i64} {
  func.func @_projection_kernel(%arg0: i32, %arg1: memref<8x8x128xf32, #tpu.memory_space<vmem>>, %arg2: memref<8x8x128xf32, #tpu.memory_space<vmem>>, %arg3: memref<128x128xf32, #tpu.memory_space<vmem>>, %arg4: memref<128x128xf32, #tpu.memory_space<vmem>>, %arg5: memref<1x128xf32, #tpu.memory_space<vmem>>, %arg6: memref<8x8x128xf32, #tpu.memory_space<vmem>>) attributes {dimension_semantics = [#tpu.dimension_semantics<parallel>], iteration_bounds = array<i64: 1>, scalar_prefetch = 0 : i64, scratch_operands = 0 : i64, tpu.core_type = #tpu.core_type<tc>, window_params = [{transform_indices = @transform_0, window_bounds = array<i64: 8, 8, 128>}, {transform_indices = @transform_1, window_bounds = array<i64: 8, 8, 128>}, {pipeline_mode = #tpu.pipeline_mode<synchronous>, transform_indices = @transform_2, window_bounds = array<i64: 128, 128>}, {pipeline_mode = #tpu.pipeline_mode<synchronous>, transform_indices = @transform_3, window_bounds = array<i64: 128, 128>}, {pipeline_mode = #tpu.pipeline_mode<synchronous>, transform_indices = @transform_4, window_bounds = array<i64: 1, 128>}, {transform_indices = @transform_5, window_bounds = array<i64: 8, 8, 128>}]} {
    %c0 = arith.constant 0 : index
    %c0_0 = arith.constant 0 : index
    %c0_1 = arith.constant 0 : index
    %0 = vector.load %arg1[%c0, %c0_0, %c0_1] : memref<8x8x128xf32, #tpu.memory_space<vmem>>, vector<8x8x128xf32>
    %1 = vector.shape_cast %0 : vector<8x8x128xf32> to vector<64x128xf32>
    %c0_2 = arith.constant 0 : index
    %c0_3 = arith.constant 0 : index
    %c0_4 = arith.constant 0 : index
    %2 = vector.load %arg2[%c0_2, %c0_3, %c0_4] : memref<8x8x128xf32, #tpu.memory_space<vmem>>, vector<8x8x128xf32>
    %3 = vector.shape_cast %2 : vector<8x8x128xf32> to vector<64x128xf32>
    %c0_5 = arith.constant 0 : index
    %c0_6 = arith.constant 0 : index
    %4 = vector.load %arg3[%c0_5, %c0_6] : memref<128x128xf32, #tpu.memory_space<vmem>>, vector<128x128xf32>
    %cst = arith.constant dense<0.000000e+00> : vector<64x128xf32>
    %5 = tpu.matmul %1, %4, %cst {dimension_numbers = #tpu.dot_dimension_numbers<[1], [0], [0], [1], [0, 0, 1, 1], [], []>} : vector<64x128xf32>, vector<128x128xf32>, vector<64x128xf32> -> vector<64x128xf32>
    %c0_7 = arith.constant 0 : index
    %c0_8 = arith.constant 0 : index
    %6 = vector.load %arg4[%c0_7, %c0_8] : memref<128x128xf32, #tpu.memory_space<vmem>>, vector<128x128xf32>
    %cst_9 = arith.constant dense<0.000000e+00> : vector<64x128xf32>
    %7 = tpu.matmul %3, %6, %cst_9 {dimension_numbers = #tpu.dot_dimension_numbers<[1], [0], [0], [1], [0, 0, 1, 1], [], []>} : vector<64x128xf32>, vector<128x128xf32>, vector<64x128xf32> -> vector<64x128xf32>
    %8 = arith.addf %5, %7 : vector<64x128xf32>
    %c0_10 = arith.constant 0 : index
    %c0_11 = arith.constant 0 : index
    %9 = vector.load %arg5[%c0_10, %c0_11] : memref<1x128xf32, #tpu.memory_space<vmem>>, vector<1x128xf32>
    %10 = vector.broadcast %9 : vector<1x128xf32> to vector<64x128xf32>
    %11 = arith.addf %8, %10 : vector<64x128xf32>
    %cst_12 = arith.constant dense<0xFF800000> : vector<64xf32>
    %12 = vector.multi_reduction <maximumf>, %11, %cst_12 [1] : vector<64x128xf32> to vector<64xf32>
    %13 = vector.shape_cast %12 : vector<64xf32> to vector<64x1xf32>
    %14 = vector.broadcast %13 : vector<64x1xf32> to vector<64x128xf32>
    %15 = arith.subf %11, %14 : vector<64x128xf32>
    %16 = math.exp %15 : vector<64x128xf32>
    %cst_13 = arith.constant dense<0.000000e+00> : vector<64xf32>
    %17 = vector.multi_reduction <add>, %16, %cst_13 [1] : vector<64x128xf32> to vector<64xf32>
    %18 = vector.shape_cast %17 : vector<64xf32> to vector<64x1xf32>
    %19 = math.log %18 : vector<64x1xf32>
    %20 = vector.broadcast %19 : vector<64x1xf32> to vector<64x128xf32>
    %21 = arith.subf %15, %20 : vector<64x128xf32>
    %22 = vector.shape_cast %21 : vector<64x128xf32> to vector<8x8x128xf32>
    %c0_14 = arith.constant 0 : index
    %c0_15 = arith.constant 0 : index
    %c0_16 = arith.constant 0 : index
    %23 = vector.load %arg6[%c0_14, %c0_15, %c0_16] : memref<8x8x128xf32, #tpu.memory_space<vmem>>, vector<8x8x128xf32>
    tpu.vector_store %arg6[%c0_14, %c0_15, %c0_16], %22 {strides = array<i32>} : memref<8x8x128xf32, #tpu.memory_space<vmem>>, vector<8x8x128xf32>,
    return
  }
  func.func @transform_0(%arg0: i32) -> (i32, i32, i32) {
    %c0_i32 = arith.constant 0 : i32
    %c0_i32_0 = arith.constant 0 : i32
    %c0_i32_1 = arith.constant 0 : i32
    return %arg0, %c0_i32, %c0_i32_0 : i32, i32, i32
  }
  func.func @transform_1(%arg0: i32) -> (i32, i32, i32) {
    %c0_i32 = arith.constant 0 : i32
    %c0_i32_0 = arith.constant 0 : i32
    %c0_i32_1 = arith.constant 0 : i32
    return %arg0, %c0_i32, %c0_i32_0 : i32, i32, i32
  }
  func.func @transform_2(%arg0: i32) -> (i32, i32) {
    %c0_i32 = arith.constant 0 : i32
    %c0_i32_0 = arith.constant 0 : i32
    %c0_i32_1 = arith.constant 0 : i32
    return %c0_i32, %c0_i32_0 : i32, i32
  }
  func.func @transform_3(%arg0: i32) -> (i32, i32) {
    %c0_i32 = arith.constant 0 : i32
    %c0_i32_0 = arith.constant 0 : i32
    %c0_i32_1 = arith.constant 0 : i32
    return %c0_i32, %c0_i32_0 : i32, i32
  }
  func.func @transform_4(%arg0: i32) -> (i32, i32) {
    %c0_i32 = arith.constant 0 : i32
    %c0_i32_0 = arith.constant 0 : i32
    %c0_i32_1 = arith.constant 0 : i32
    return %c0_i32, %c0_i32_0 : i32, i32
  }
  func.func @transform_5(%arg0: i32) -> (i32, i32, i32) {
    %c0_i32 = arith.constant 0 : i32
    %c0_i32_0 = arith.constant 0 : i32
    %c0_i32_1 = arith.constant 0 : i32
    return %arg0, %c0_i32, %c0_i32_0 : i32, i32, i32
  }
}

module attributes {stable_mosaic.version = 11 : i64} {
  func.func @_recurrence_kernel(%arg0: i32, %arg1: memref<8x8x128xf32, #tpu.memory_space<vmem>>, %arg2: memref<8x128xf32, #tpu.memory_space<vmem>>, %arg3: memref<128x128xf32, #tpu.memory_space<vmem>>, %arg4: memref<128x128xf32, #tpu.memory_space<vmem>>, %arg5: memref<1x128xf32, #tpu.memory_space<vmem>>, %arg6: memref<8x8x128xf32, #tpu.memory_space<vmem>>, %arg7: memref<8x128xf32, #tpu.memory_space<vmem>>) attributes {dimension_semantics = [#tpu.dimension_semantics<arbitrary>], iteration_bounds = array<i64: 1>, scalar_prefetch = 0 : i64, scratch_operands = 0 : i64, tpu.core_type = #tpu.core_type<tc>, window_params = [{transform_indices = @transform_0, window_bounds = array<i64: 8, 8, 128>}, {pipeline_mode = #tpu.pipeline_mode<synchronous>, transform_indices = @transform_1, window_bounds = array<i64: 8, 128>}, {pipeline_mode = #tpu.pipeline_mode<synchronous>, transform_indices = @transform_2, window_bounds = array<i64: 128, 128>}, {pipeline_mode = #tpu.pipeline_mode<synchronous>, transform_indices = @transform_3, window_bounds = array<i64: 128, 128>}, {pipeline_mode = #tpu.pipeline_mode<synchronous>, transform_indices = @transform_4, window_bounds = array<i64: 1, 128>}, {transform_indices = @transform_5, window_bounds = array<i64: 8, 8, 128>}, {pipeline_mode = #tpu.pipeline_mode<synchronous>, transform_indices = @transform_6, window_bounds = array<i64: 8, 128>}]} {
    %c0_i32 = arith.constant 0 : i32
    %0 = arith.cmpi eq, %arg0, %c0_i32 : i32
    %1 = arith.extui %0 : i1 to i32
    %c0_i32_0 = arith.constant 0 : i32
    %2 = arith.cmpi ne, %1, %c0_i32_0 : i32
    scf.if %2 {
      %c0_58 = arith.constant 0 : index
      %c0_59 = arith.constant 0 : index
      %104 = vector.load %arg2[%c0_58, %c0_59] : memref<8x128xf32, #tpu.memory_space<vmem>>, vector<8x128xf32>
      %c0_60 = arith.constant 0 : index
      %c0_61 = arith.constant 0 : index
      %105 = vector.load %arg7[%c0_60, %c0_61] : memref<8x128xf32, #tpu.memory_space<vmem>>, vector<8x128xf32>
      tpu.vector_store %arg7[%c0_60, %c0_61], %104 {strides = array<i32>} : memref<8x128xf32, #tpu.memory_space<vmem>>, vector<8x128xf32>,
    } else {
    }
    %c0 = arith.constant 0 : index
    %c0_1 = arith.constant 0 : index
    %3 = vector.load %arg3[%c0, %c0_1] : memref<128x128xf32, #tpu.memory_space<vmem>>, vector<128x128xf32>
    %c0_2 = arith.constant 0 : index
    %c0_3 = arith.constant 0 : index
    %4 = vector.load %arg4[%c0_2, %c0_3] : memref<128x128xf32, #tpu.memory_space<vmem>>, vector<128x128xf32>
    %c0_4 = arith.constant 0 : index
    %c0_5 = arith.constant 0 : index
    %5 = vector.load %arg5[%c0_4, %c0_5] : memref<1x128xf32, #tpu.memory_space<vmem>>, vector<1x128xf32>
    %c0_6 = arith.constant 0 : index
    %c0_7 = arith.constant 0 : index
    %6 = vector.load %arg7[%c0_6, %c0_7] : memref<8x128xf32, #tpu.memory_space<vmem>>, vector<8x128xf32>
    %c0_i32_8 = arith.constant 0 : i32
    %7 = arith.index_cast %c0_i32_8 : i32 to index
    %c0_9 = arith.constant 0 : index
    %c0_10 = arith.constant 0 : index
    %8 = vector.load %arg6[%7, %c0_9, %c0_10] : memref<8x8x128xf32, #tpu.memory_space<vmem>>, vector<1x8x128xf32>
    %9 = vector.shape_cast %8 : vector<1x8x128xf32> to vector<8x128xf32>
    %10 = vector.shape_cast %6 : vector<8x128xf32> to vector<1x8x128xf32>
    tpu.vector_store %arg6[%7, %c0_9, %c0_10], %10 {strides = array<i32>} : memref<8x8x128xf32, #tpu.memory_space<vmem>>, vector<1x8x128xf32>,
    %11 = arith.index_cast %c0_i32_8 : i32 to index
    %c0_11 = arith.constant 0 : index
    %c0_12 = arith.constant 0 : index
    %12 = vector.load %arg1[%11, %c0_11, %c0_12] : memref<8x8x128xf32, #tpu.memory_space<vmem>>, vector<1x8x128xf32>
    %13 = vector.shape_cast %12 : vector<1x8x128xf32> to vector<8x128xf32>
    %cst = arith.constant dense<0.000000e+00> : vector<8x128xf32>
    %14 = tpu.matmul %13, %3, %cst {dimension_numbers = #tpu.dot_dimension_numbers<[1], [0], [0], [1], [0, 0, 1, 1], [], []>} : vector<8x128xf32>, vector<128x128xf32>, vector<8x128xf32> -> vector<8x128xf32>
    %cst_13 = arith.constant dense<0.000000e+00> : vector<8x128xf32>
    %15 = tpu.matmul %6, %4, %cst_13 {dimension_numbers = #tpu.dot_dimension_numbers<[1], [0], [0], [1], [0, 0, 1, 1], [], []>} : vector<8x128xf32>, vector<128x128xf32>, vector<8x128xf32> -> vector<8x128xf32>
    %16 = arith.addf %14, %15 : vector<8x128xf32>
    %17 = vector.broadcast %5 : vector<1x128xf32> to vector<8x128xf32>
    %18 = arith.addf %16, %17 : vector<8x128xf32>
    %c1_i32 = arith.constant 1 : i32
    %19 = arith.index_cast %c1_i32 : i32 to index
    %c0_14 = arith.constant 0 : index
    %c0_15 = arith.constant 0 : index
    %20 = vector.load %arg6[%19, %c0_14, %c0_15] : memref<8x8x128xf32, #tpu.memory_space<vmem>>, vector<1x8x128xf32>
    %21 = vector.shape_cast %20 : vector<1x8x128xf32> to vector<8x128xf32>
    %22 = vector.shape_cast %18 : vector<8x128xf32> to vector<1x8x128xf32>
    tpu.vector_store %arg6[%19, %c0_14, %c0_15], %22 {strides = array<i32>} : memref<8x8x128xf32, #tpu.memory_space<vmem>>, vector<1x8x128xf32>,
    %23 = arith.index_cast %c1_i32 : i32 to index
    %c0_16 = arith.constant 0 : index
    %c0_17 = arith.constant 0 : index
    %24 = vector.load %arg1[%23, %c0_16, %c0_17] : memref<8x8x128xf32, #tpu.memory_space<vmem>>, vector<1x8x128xf32>
    %25 = vector.shape_cast %24 : vector<1x8x128xf32> to vector<8x128xf32>
    %cst_18 = arith.constant dense<0.000000e+00> : vector<8x128xf32>
    %26 = tpu.matmul %25, %3, %cst_18 {dimension_numbers = #tpu.dot_dimension_numbers<[1], [0], [0], [1], [0, 0, 1, 1], [], []>} : vector<8x128xf32>, vector<128x128xf32>, vector<8x128xf32> -> vector<8x128xf32>
    %cst_19 = arith.constant dense<0.000000e+00> : vector<8x128xf32>
    %27 = tpu.matmul %18, %4, %cst_19 {dimension_numbers = #tpu.dot_dimension_numbers<[1], [0], [0], [1], [0, 0, 1, 1], [], []>} : vector<8x128xf32>, vector<128x128xf32>, vector<8x128xf32> -> vector<8x128xf32>
    %28 = arith.addf %26, %27 : vector<8x128xf32>
    %29 = vector.broadcast %5 : vector<1x128xf32> to vector<8x128xf32>
    %30 = arith.addf %28, %29 : vector<8x128xf32>
    %c2_i32 = arith.constant 2 : i32
    %31 = arith.index_cast %c2_i32 : i32 to index
    %c0_20 = arith.constant 0 : index
    %c0_21 = arith.constant 0 : index
    %32 = vector.load %arg6[%31, %c0_20, %c0_21] : memref<8x8x128xf32, #tpu.memory_space<vmem>>, vector<1x8x128xf32>
    %33 = vector.shape_cast %32 : vector<1x8x128xf32> to vector<8x128xf32>
    %34 = vector.shape_cast %30 : vector<8x128xf32> to vector<1x8x128xf32>
    tpu.vector_store %arg6[%31, %c0_20, %c0_21], %34 {strides = array<i32>} : memref<8x8x128xf32, #tpu.memory_space<vmem>>, vector<1x8x128xf32>,
    %35 = arith.index_cast %c2_i32 : i32 to index
    %c0_22 = arith.constant 0 : index
    %c0_23 = arith.constant 0 : index
    %36 = vector.load %arg1[%35, %c0_22, %c0_23] : memref<8x8x128xf32, #tpu.memory_space<vmem>>, vector<1x8x128xf32>
    %37 = vector.shape_cast %36 : vector<1x8x128xf32> to vector<8x128xf32>
    %cst_24 = arith.constant dense<0.000000e+00> : vector<8x128xf32>
    %38 = tpu.matmul %37, %3, %cst_24 {dimension_numbers = #tpu.dot_dimension_numbers<[1], [0], [0], [1], [0, 0, 1, 1], [], []>} : vector<8x128xf32>, vector<128x128xf32>, vector<8x128xf32> -> vector<8x128xf32>
    %cst_25 = arith.constant dense<0.000000e+00> : vector<8x128xf32>
    %39 = tpu.matmul %30, %4, %cst_25 {dimension_numbers = #tpu.dot_dimension_numbers<[1], [0], [0], [1], [0, 0, 1, 1], [], []>} : vector<8x128xf32>, vector<128x128xf32>, vector<8x128xf32> -> vector<8x128xf32>
    %40 = arith.addf %38, %39 : vector<8x128xf32>
    %41 = vector.broadcast %5 : vector<1x128xf32> to vector<8x128xf32>
    %42 = arith.addf %40, %41 : vector<8x128xf32>
    %c3_i32 = arith.constant 3 : i32
    %43 = arith.index_cast %c3_i32 : i32 to index
    %c0_26 = arith.constant 0 : index
    %c0_27 = arith.constant 0 : index
    %44 = vector.load %arg6[%43, %c0_26, %c0_27] : memref<8x8x128xf32, #tpu.memory_space<vmem>>, vector<1x8x128xf32>
    %45 = vector.shape_cast %44 : vector<1x8x128xf32> to vector<8x128xf32>
    %46 = vector.shape_cast %42 : vector<8x128xf32> to vector<1x8x128xf32>
    tpu.vector_store %arg6[%43, %c0_26, %c0_27], %46 {strides = array<i32>} : memref<8x8x128xf32, #tpu.memory_space<vmem>>, vector<1x8x128xf32>,
    %47 = arith.index_cast %c3_i32 : i32 to index
    %c0_28 = arith.constant 0 : index
    %c0_29 = arith.constant 0 : index
    %48 = vector.load %arg1[%47, %c0_28, %c0_29] : memref<8x8x128xf32, #tpu.memory_space<vmem>>, vector<1x8x128xf32>
    %49 = vector.shape_cast %48 : vector<1x8x128xf32> to vector<8x128xf32>
    %cst_30 = arith.constant dense<0.000000e+00> : vector<8x128xf32>
    %50 = tpu.matmul %49, %3, %cst_30 {dimension_numbers = #tpu.dot_dimension_numbers<[1], [0], [0], [1], [0, 0, 1, 1], [], []>} : vector<8x128xf32>, vector<128x128xf32>, vector<8x128xf32> -> vector<8x128xf32>
    %cst_31 = arith.constant dense<0.000000e+00> : vector<8x128xf32>
    %51 = tpu.matmul %42, %4, %cst_31 {dimension_numbers = #tpu.dot_dimension_numbers<[1], [0], [0], [1], [0, 0, 1, 1], [], []>} : vector<8x128xf32>, vector<128x128xf32>, vector<8x128xf32> -> vector<8x128xf32>
    %52 = arith.addf %50, %51 : vector<8x128xf32>
    %53 = vector.broadcast %5 : vector<1x128xf32> to vector<8x128xf32>
    %54 = arith.addf %52, %53 : vector<8x128xf32>
    %c4_i32 = arith.constant 4 : i32
    %55 = arith.index_cast %c4_i32 : i32 to index
    %c0_32 = arith.constant 0 : index
    %c0_33 = arith.constant 0 : index
    %56 = vector.load %arg6[%55, %c0_32, %c0_33] : memref<8x8x128xf32, #tpu.memory_space<vmem>>, vector<1x8x128xf32>
    %57 = vector.shape_cast %56 : vector<1x8x128xf32> to vector<8x128xf32>
    %58 = vector.shape_cast %54 : vector<8x128xf32> to vector<1x8x128xf32>
    tpu.vector_store %arg6[%55, %c0_32, %c0_33], %58 {strides = array<i32>} : memref<8x8x128xf32, #tpu.memory_space<vmem>>, vector<1x8x128xf32>,
    %59 = arith.index_cast %c4_i32 : i32 to index
    %c0_34 = arith.constant 0 : index
    %c0_35 = arith.constant 0 : index
    %60 = vector.load %arg1[%59, %c0_34, %c0_35] : memref<8x8x128xf32, #tpu.memory_space<vmem>>, vector<1x8x128xf32>
    %61 = vector.shape_cast %60 : vector<1x8x128xf32> to vector<8x128xf32>
    %cst_36 = arith.constant dense<0.000000e+00> : vector<8x128xf32>
    %62 = tpu.matmul %61, %3, %cst_36 {dimension_numbers = #tpu.dot_dimension_numbers<[1], [0], [0], [1], [0, 0, 1, 1], [], []>} : vector<8x128xf32>, vector<128x128xf32>, vector<8x128xf32> -> vector<8x128xf32>
    %cst_37 = arith.constant dense<0.000000e+00> : vector<8x128xf32>
    %63 = tpu.matmul %54, %4, %cst_37 {dimension_numbers = #tpu.dot_dimension_numbers<[1], [0], [0], [1], [0, 0, 1, 1], [], []>} : vector<8x128xf32>, vector<128x128xf32>, vector<8x128xf32> -> vector<8x128xf32>
    %64 = arith.addf %62, %63 : vector<8x128xf32>
    %65 = vector.broadcast %5 : vector<1x128xf32> to vector<8x128xf32>
    %66 = arith.addf %64, %65 : vector<8x128xf32>
    %c5_i32 = arith.constant 5 : i32
    %67 = arith.index_cast %c5_i32 : i32 to index
    %c0_38 = arith.constant 0 : index
    %c0_39 = arith.constant 0 : index
    %68 = vector.load %arg6[%67, %c0_38, %c0_39] : memref<8x8x128xf32, #tpu.memory_space<vmem>>, vector<1x8x128xf32>
    %69 = vector.shape_cast %68 : vector<1x8x128xf32> to vector<8x128xf32>
    %70 = vector.shape_cast %66 : vector<8x128xf32> to vector<1x8x128xf32>
    tpu.vector_store %arg6[%67, %c0_38, %c0_39], %70 {strides = array<i32>} : memref<8x8x128xf32, #tpu.memory_space<vmem>>, vector<1x8x128xf32>,
    %71 = arith.index_cast %c5_i32 : i32 to index
    %c0_40 = arith.constant 0 : index
    %c0_41 = arith.constant 0 : index
    %72 = vector.load %arg1[%71, %c0_40, %c0_41] : memref<8x8x128xf32, #tpu.memory_space<vmem>>, vector<1x8x128xf32>
    %73 = vector.shape_cast %72 : vector<1x8x128xf32> to vector<8x128xf32>
    %cst_42 = arith.constant dense<0.000000e+00> : vector<8x128xf32>
    %74 = tpu.matmul %73, %3, %cst_42 {dimension_numbers = #tpu.dot_dimension_numbers<[1], [0], [0], [1], [0, 0, 1, 1], [], []>} : vector<8x128xf32>, vector<128x128xf32>, vector<8x128xf32> -> vector<8x128xf32>
    %cst_43 = arith.constant dense<0.000000e+00> : vector<8x128xf32>
    %75 = tpu.matmul %66, %4, %cst_43 {dimension_numbers = #tpu.dot_dimension_numbers<[1], [0], [0], [1], [0, 0, 1, 1], [], []>} : vector<8x128xf32>, vector<128x128xf32>, vector<8x128xf32> -> vector<8x128xf32>
    %76 = arith.addf %74, %75 : vector<8x128xf32>
    %77 = vector.broadcast %5 : vector<1x128xf32> to vector<8x128xf32>
    %78 = arith.addf %76, %77 : vector<8x128xf32>
    %c6_i32 = arith.constant 6 : i32
    %79 = arith.index_cast %c6_i32 : i32 to index
    %c0_44 = arith.constant 0 : index
    %c0_45 = arith.constant 0 : index
    %80 = vector.load %arg6[%79, %c0_44, %c0_45] : memref<8x8x128xf32, #tpu.memory_space<vmem>>, vector<1x8x128xf32>
    %81 = vector.shape_cast %80 : vector<1x8x128xf32> to vector<8x128xf32>
    %82 = vector.shape_cast %78 : vector<8x128xf32> to vector<1x8x128xf32>
    tpu.vector_store %arg6[%79, %c0_44, %c0_45], %82 {strides = array<i32>} : memref<8x8x128xf32, #tpu.memory_space<vmem>>, vector<1x8x128xf32>,
    %83 = arith.index_cast %c6_i32 : i32 to index
    %c0_46 = arith.constant 0 : index
    %c0_47 = arith.constant 0 : index
    %84 = vector.load %arg1[%83, %c0_46, %c0_47] : memref<8x8x128xf32, #tpu.memory_space<vmem>>, vector<1x8x128xf32>
    %85 = vector.shape_cast %84 : vector<1x8x128xf32> to vector<8x128xf32>
    %cst_48 = arith.constant dense<0.000000e+00> : vector<8x128xf32>
    %86 = tpu.matmul %85, %3, %cst_48 {dimension_numbers = #tpu.dot_dimension_numbers<[1], [0], [0], [1], [0, 0, 1, 1], [], []>} : vector<8x128xf32>, vector<128x128xf32>, vector<8x128xf32> -> vector<8x128xf32>
    %cst_49 = arith.constant dense<0.000000e+00> : vector<8x128xf32>
    %87 = tpu.matmul %78, %4, %cst_49 {dimension_numbers = #tpu.dot_dimension_numbers<[1], [0], [0], [1], [0, 0, 1, 1], [], []>} : vector<8x128xf32>, vector<128x128xf32>, vector<8x128xf32> -> vector<8x128xf32>
    %88 = arith.addf %86, %87 : vector<8x128xf32>
    %89 = vector.broadcast %5 : vector<1x128xf32> to vector<8x128xf32>
    %90 = arith.addf %88, %89 : vector<8x128xf32>
    %c7_i32 = arith.constant 7 : i32
    %91 = arith.index_cast %c7_i32 : i32 to index
    %c0_50 = arith.constant 0 : index
    %c0_51 = arith.constant 0 : index
    %92 = vector.load %arg6[%91, %c0_50, %c0_51] : memref<8x8x128xf32, #tpu.memory_space<vmem>>, vector<1x8x128xf32>
    %93 = vector.shape_cast %92 : vector<1x8x128xf32> to vector<8x128xf32>
    %94 = vector.shape_cast %90 : vector<8x128xf32> to vector<1x8x128xf32>
    tpu.vector_store %arg6[%91, %c0_50, %c0_51], %94 {strides = array<i32>} : memref<8x8x128xf32, #tpu.memory_space<vmem>>, vector<1x8x128xf32>,
    %95 = arith.index_cast %c7_i32 : i32 to index
    %c0_52 = arith.constant 0 : index
    %c0_53 = arith.constant 0 : index
    %96 = vector.load %arg1[%95, %c0_52, %c0_53] : memref<8x8x128xf32, #tpu.memory_space<vmem>>, vector<1x8x128xf32>
    %97 = vector.shape_cast %96 : vector<1x8x128xf32> to vector<8x128xf32>
    %cst_54 = arith.constant dense<0.000000e+00> : vector<8x128xf32>
    %98 = tpu.matmul %97, %3, %cst_54 {dimension_numbers = #tpu.dot_dimension_numbers<[1], [0], [0], [1], [0, 0, 1, 1], [], []>} : vector<8x128xf32>, vector<128x128xf32>, vector<8x128xf32> -> vector<8x128xf32>
    %cst_55 = arith.constant dense<0.000000e+00> : vector<8x128xf32>
    %99 = tpu.matmul %90, %4, %cst_55 {dimension_numbers = #tpu.dot_dimension_numbers<[1], [0], [0], [1], [0, 0, 1, 1], [], []>} : vector<8x128xf32>, vector<128x128xf32>, vector<8x128xf32> -> vector<8x128xf32>
    %100 = arith.addf %98, %99 : vector<8x128xf32>
    %101 = vector.broadcast %5 : vector<1x128xf32> to vector<8x128xf32>
    %102 = arith.addf %100, %101 : vector<8x128xf32>
    %c8_i32 = arith.constant 8 : i32
    %c0_56 = arith.constant 0 : index
    %c0_57 = arith.constant 0 : index
    %103 = vector.load %arg7[%c0_56, %c0_57] : memref<8x128xf32, #tpu.memory_space<vmem>>, vector<8x128xf32>
    tpu.vector_store %arg7[%c0_56, %c0_57], %102 {strides = array<i32>} : memref<8x128xf32, #tpu.memory_space<vmem>>, vector<8x128xf32>,
    return
  }
  func.func @transform_0(%arg0: i32) -> (i32, i32, i32) {
    %c0_i32 = arith.constant 0 : i32
    %c0_i32_0 = arith.constant 0 : i32
    %c0_i32_1 = arith.constant 0 : i32
    return %arg0, %c0_i32, %c0_i32_0 : i32, i32, i32
  }
  func.func @transform_1(%arg0: i32) -> (i32, i32) {
    %c0_i32 = arith.constant 0 : i32
    %c0_i32_0 = arith.constant 0 : i32
    %c0_i32_1 = arith.constant 0 : i32
    return %c0_i32, %c0_i32_0 : i32, i32
  }
  func.func @transform_2(%arg0: i32) -> (i32, i32) {
    %c0_i32 = arith.constant 0 : i32
    %c0_i32_0 = arith.constant 0 : i32
    %c0_i32_1 = arith.constant 0 : i32
    return %c0_i32, %c0_i32_0 : i32, i32
  }
  func.func @transform_3(%arg0: i32) -> (i32, i32) {
    %c0_i32 = arith.constant 0 : i32
    %c0_i32_0 = arith.constant 0 : i32
    %c0_i32_1 = arith.constant 0 : i32
    return %c0_i32, %c0_i32_0 : i32, i32
  }
  func.func @transform_4(%arg0: i32) -> (i32, i32) {
    %c0_i32 = arith.constant 0 : i32
    %c0_i32_0 = arith.constant 0 : i32
    %c0_i32_1 = arith.constant 0 : i32
    return %c0_i32, %c0_i32_0 : i32, i32
  }
  func.func @transform_5(%arg0: i32) -> (i32, i32, i32) {
    %c0_i32 = arith.constant 0 : i32
    %c0_i32_0 = arith.constant 0 : i32
    %c0_i32_1 = arith.constant 0 : i32
    return %arg0, %c0_i32, %c0_i32_0 : i32, i32, i32
  }
  func.func @transform_6(%arg0: i32) -> (i32, i32) {
    %c0_i32 = arith.constant 0 : i32
    %c0_i32_0 = arith.constant 0 : i32
    %c0_i32_1 = arith.constant 0 : i32
    return %c0_i32, %c0_i32_0 : i32, i32
  }
}

</mosaic_0001>

<bundles_post_ra>
// kernel: rnn_forward_sequence.3
= control target key start
LH: loop header
LB: loop body
LE: loop exit
PB: predicated region body
PF: predicated region fallthrough
CT: control target
= control target key end

     0   :  { %s859_s3 = inlined_call_operand.vmem [shape: f32[128,128], index: 3, kind: input, shape index: {}]   ;;  %s860_s2 = inlined_call_operand.vmem [shape: f32[128,128], index: 2, kind: input, shape index: {}]   ;;  %s861_s1 = inlined_call_operand.vmem [shape: f32[8,8,128], index: 1, kind: input, shape index: {}]   ;;  %s862_s0 = inlined_call_operand.vmem [shape: f32[8,8,128], index: 0, kind: input, shape index: {}]   ;;  %s863_s4 = inlined_call_operand.vmem [shape: f32[1,128], index: 4, kind: input, shape index: {}]   ;;  %s864_s5 = inlined_call_operand.vmem [shape: f32[8,8,128], index: 5, kind: output, shape index: {}]  }
   0x1   :  { %v52_v0 = vld [vmem:[%s859_s3] sm:$0xff]  ;;  %v53_v1 = vld [vmem:[%s859_s3 + $0x8] sm:$0xff]  ;;  %v54_v5 = vld [vmem:[%s859_s3 + $0x10] sm:$0xff] }
   0x2   :  { %v36_v2 = vld [vmem:[%s860_s2] sm:$0xff]  ;;  %v522_v3 = vpack.c.bf16 %v53_v1, %v52_v0  ;;  %v37_v4 = vld [vmem:[%s860_s2 + $0x8] sm:$0xff]  ;;  %v55_v6 = vld [vmem:[%s859_s3 + $0x18] sm:$0xff] }
   0x3   :  { %v554_v7 = vpack.c.bf16 %v37_v4, %v36_v2  ;;  %v526_v8 = vpack.c.bf16 %v55_v6, %v54_v5  ;;  %v38_v9 = vld [vmem:[%s860_s2 + $0x10] sm:$0xff]  ;;  %v39_v10 = vld [vmem:[%s860_s2 + $0x18] sm:$0xff]  ;;  %v56_v11 = vld [vmem:[%s859_s3 + $0x20] sm:$0xff] }
   0x4   :  { %523 = vmatprep.subr.bf16.mxu1 %v522_v3  ;;  %v558_v12 = vpack.c.bf16 %v39_v10, %v38_v9  ;;  %v57_v13 = vld [vmem:[%s859_s3 + $0x28] sm:$0xff]  ;;  %v40_v14 = vld [vmem:[%s860_s2 + $0x20] sm:$0xff]  ;;  %v58_v18 = vld [vmem:[%s859_s3 + $0x30] sm:$0xff] }
   0x5   :  { %v41_v15 = vld [vmem:[%s860_s2 + $0x28] sm:$0xff]  ;;  %555 = vmatprep.subr.bf16.mxu0 %v554_v7  ;;  %525 = vmatpush3.bf16.msra.mxu1 %v522_v3  ;;  %v530_v16 = vpack.c.bf16 %v57_v13, %v56_v11  ;;  %v59_v19 = vld [vmem:[%s859_s3 + $0x38] sm:$0xff]  ;;  %v42_v20 = vld [vmem:[%s860_s2 + $0x30] sm:$0xff] }
   0x6   :  { %557 = vmatpush3.bf16.msra.mxu0 %v554_v7  ;;  %527 = vmatprep.subr.bf16.mxu1 %v526_v8  ;;  %v562_v17 = vpack.c.bf16 %v41_v15, %v40_v14  ;;  %v43_v21 = vld [vmem:[%s860_s2 + $0x38] sm:$0xff]  ;;  %v534_v22 = vpack.c.bf16 %v59_v19, %v58_v18  ;;  %v60_v24 = vld [vmem:[%s859_s3 + $0x40] sm:$0xff]  ;;  %v61_v25 = vld [vmem:[%s859_s3 + $0x48] sm:$0xff] }
   0x7   :  { %559 = vmatprep.subr.bf16.mxu0 %v558_v12  ;;  %v566_v23 = vpack.c.bf16 %v43_v21, %v42_v20  ;;  %v28_v26 = vld [vmem:[%s861_s1] sm:$0xff]  ;;  %v45_v28 = vld [vmem:[%s860_s2 + $0x48] sm:$0xff]  ;;  %v538_v30 = vpack.c.bf16 %v61_v25, %v60_v24  ;;  %v62_v32 = vld [vmem:[%s859_s3 + $0x50] sm:$0xff] }
   0x8   :  { %v44_v27 = vld [vmem:[%s860_s2 + $0x40] sm:$0xff]  ;;  %466 = vmatprep.mubr.f32.mxu1 %v28_v26  ;;  %v63_v33 = vld [vmem:[%s859_s3 + $0x58] sm:$0xff]  ;;  %v46_v34 = vld [vmem:[%s860_s2 + $0x50] sm:$0xff] }
   0x9   :  { %529 = vmatpush3.bf16.msra.mxu1 %v526_v8  ;;  %v20_v29 = vld [vmem:[%s862_s0] sm:$0xff]  ;;  %v570_v31 = vpack.c.bf16 %v45_v28, %v44_v27  ;;  %v47_v35 = vld [vmem:[%s860_s2 + $0x58] sm:$0xff]  ;;  %v542_v36 = vpack.c.bf16 %v63_v33, %v62_v32  ;;  %v65_v39 = vld [vmem:[%s859_s3 + $0x68] sm:$0xff] }
   0xa   :  { %561 = vmatpush3.bf16.msra.mxu0 %v558_v12  ;;  %531 = vmatprep.subr.bf16.mxu1 %v530_v16  ;;  %v574_v37 = vpack.c.bf16 %v47_v35, %v46_v34  ;;  %v64_v38 = vld [vmem:[%s859_s3 + $0x60] sm:$0xff]  ;;  %v49_v41 = vld [vmem:[%s860_s2 + $0x68] sm:$0xff]  ;;  %v66_v44 = vld [vmem:[%s859_s3 + $0x70] sm:$0xff] }
   0xb   :  { %563 = vmatprep.subr.bf16.mxu0 %v562_v17  ;;  %510 = vmatprep.mubr.f32.mxu0 %v20_v29  ;;  %v48_v40 = vld [vmem:[%s860_s2 + $0x60] sm:$0xff]  ;;  %v546_v42 = vpack.c.bf16 %v65_v39, %v64_v38  ;;  %v67_v45 = vld [vmem:[%s859_s3 + $0x78] sm:$0xff]  ;;  %v50_v46 = vld [vmem:[%s860_s2 + $0x70] sm:$0xff] }
   0xc   :  { %v578_v43 = vpack.c.bf16 %v49_v41, %v48_v40  ;;  %v51_v47 = vld [vmem:[%s860_s2 + $0x78] sm:$0xff]  ;;  %v550_v48 = vpack.c.bf16 %v67_v45, %v66_v44  ;;  %v29_v50 = vld [vmem:[%s861_s1 + $0x8] sm:$0xff]  ;;  %v30_v52 = vld [vmem:[%s861_s1 + $0x10] sm:$0xff] }
   0xd   :  { %533 = vmatpush3.bf16.msra.mxu1 %v530_v16  ;;  %v582_v49 = vpack.c.bf16 %v51_v47, %v50_v46  ;;  %v21_v51 = vld [vmem:[%s862_s0 + $0x8] sm:$0xff]  ;;  %v22_v53 = vld [vmem:[%s862_s0 + $0x10] sm:$0xff]  ;;  %v31_v54 = vld [vmem:[%s861_s1 + $0x18] sm:$0xff] }
   0xe   :  { %565 = vmatpush3.bf16.msra.mxu0 %v562_v17  ;;  %535 = vmatprep.subr.bf16.mxu1 %v534_v22  ;;  %v23_v55 = vld [vmem:[%s862_s0 + $0x18] sm:$0xff]  ;;  %v32_v56 = vld [vmem:[%s861_s1 + $0x20] sm:$0xff]  ;;  %v33_v58 = vld [vmem:[%s861_s1 + $0x28] sm:$0xff] }
   0xf   :  { %567 = vmatprep.subr.bf16.mxu0 %v566_v23  ;;  %v24_v57 = vld [vmem:[%s862_s0 + $0x20] sm:$0xff]  ;;  %v25_v59 = vld [vmem:[%s862_s0 + $0x28] sm:$0xff]  ;;  %v34_v60 = vld [vmem:[%s861_s1 + $0x30] sm:$0xff] }
  0x10   :  { %v26_v61 = vld [vmem:[%s862_s0 + $0x30] sm:$0xff]  ;;  %v35_v62 = vld [vmem:[%s861_s1 + $0x38] sm:$0xff]  ;;  %v385_v3 = vld [vmem:[%s863_s4] ss:$0 sm:$0xff] }
  0x11   :  { %537 = vmatpush3.bf16.msra.mxu1 %v534_v22  ;;  %v27_v63 = vld [vmem:[%s862_s0 + $0x38] sm:$0xff] }
  0x12   :  { %569 = vmatpush3.bf16.msra.mxu0 %v566_v23  ;;  %539 = vmatprep.subr.bf16.mxu1 %v538_v30 }
  0x13   :  { %571 = vmatprep.subr.bf16.mxu0 %v570_v31 }
  0x15   :  { %541 = vmatpush3.bf16.msra.mxu1 %v538_v30 }
  0x16   :  { %573 = vmatpush3.bf16.msra.mxu0 %v570_v31  ;;  %543 = vmatprep.subr.bf16.mxu1 %v542_v36 }
  0x17   :  { %575 = vmatprep.subr.bf16.mxu0 %v574_v37 }
  0x19   :  { %545 = vmatpush3.bf16.msra.mxu1 %v542_v36 }
  0x1a   :  { %577 = vmatpush3.bf16.msra.mxu0 %v574_v37  ;;  %547 = vmatprep.subr.bf16.mxu1 %v546_v42 }
  0x1b   :  { %579 = vmatprep.subr.bf16.mxu0 %v578_v43 }
  0x1d   :  { %549 = vmatpush3.bf16.msra.mxu1 %v546_v42 }
  0x1e   :  { %581 = vmatpush3.bf16.msra.mxu0 %v578_v43  ;;  %551 = vmatprep.subr.bf16.mxu1 %v550_v48 }
  0x1f   :  { %583 = vmatprep.subr.bf16.mxu0 %v582_v49 }
  0x21   :  { %553 = vmatpush3.bf16.msra.mxu1 %v550_v48 }
  0x22   :  { %585 = vmatpush3.bf16.msra.mxu0 %v582_v49 }
  0x24   :  { %467 = vmatmul.mubr.f32.vlgmr.msra.gmra.mrb[0].mxu1 %v29_v50 }
  0x25   :  { %511 = vmatmul.mubr.f32.vlgmr.msra.gmra.mrb[0].mxu0 %v21_v51  ;;  %469 = vmatprep.mubr.f32.mxu1 %v30_v52 }
  0x26   :  { %513 = vmatprep.mubr.f32.mxu0 %v22_v53 }
  0x28   :  { %470 = vmatmul.mubr.f32.gmra.mrb[2].mxu1 %v31_v54 }
  0x29   :  { %514 = vmatmul.mubr.f32.gmra.mrb[2].mxu0 %v23_v55  ;;  %472 = vmatprep.mubr.f32.mxu1 %v32_v56 }
  0x2a   :  { %516 = vmatprep.mubr.f32.mxu0 %v24_v57 }
  0x2c   :  { %473 = vmatmul.mubr.f32.gmra.mrb[4].mxu1 %v33_v58 }
  0x2d   :  { %517 = vmatmul.mubr.f32.gmra.mrb[4].mxu0 %v25_v59  ;;  %475 = vmatprep.mubr.f32.mxu1 %v34_v60 }
  0x2e   :  { %519 = vmatprep.mubr.f32.mxu0 %v26_v61 }
  0x30   :  { %476 = vmatmul.mubr.f32.gmra.mrb[6].mxu1 %v35_v62 }
  0x31   :  { %520 = vmatmul.mubr.f32.gmra.mrb[6].mxu0 %v27_v63 }
  0xf7   :  { %v468_v0 = vpop.f32.mrb[0].mxu1 }
  0xf8   :  { %v512_v1 = vpop.f32.mrb[0].mxu0  ;;  %v134_v2 = vpop.f32.mrb[1].mxu1 }
  0xf9   :  { %v245_v4 = vadd.f32 %v512_v1, %v468_v0  ;;  %v239_v5 = vpop.f32.mrb[1].mxu0 }
  0xfa   :  { %v240_v6 = vadd.f32 %v239_v5, %v134_v2 }
  0xfb   :  { %v471_v7 = vpop.f32.mrb[2].mxu1  ;;  %v286_v8 = vadd.f32 %v385_v3, %v245_v4 }
  0xfc   :  { %v515_v9 = vpop.f32.mrb[2].mxu0  ;;  %v144_v10 = vpop.f32.mrb[3].mxu1  ;;  %v285_v16 = vadd.f32 %v385_v3, %v240_v6 }
  0xfd   :  { %v255_v11 = vadd.f32 %v515_v9, %v471_v7  ;;  %295 = vmax.xlane.f32.xlu0 %v286_v8  ;;  %v249_v12 = vpop.f32.mrb[3].mxu0 }
  0xfe   :  { %v250_v13 = vadd.f32 %v249_v12, %v144_v10 }
  0xff   :  { %v474_v14 = vpop.f32.mrb[4].mxu1  ;;  %v288_v15 = vadd.f32 %v385_v3, %v255_v11 }
 0x100   :  { %v518_v17 = vpop.f32.mrb[4].mxu0  ;;  %v154_v18 = vpop.f32.mrb[5].mxu1  ;;  %v287_v23 = vadd.f32 %v385_v3, %v250_v13 }
 0x101   :  { %v265_v19 = vadd.f32 %v518_v17, %v474_v14  ;;  %299 = vmax.xlane.f32.xlu1 %v288_v15  ;;  %v259_v20 = vpop.f32.mrb[5].mxu0  ;;  %293 = vmax.xlane.f32.xlu0 %v285_v16 }
 0x102   :  { %v260_v21 = vadd.f32 %v259_v20, %v154_v18 }
 0x103   :  { %v477_v22 = vpop.f32.mrb[6].mxu1  ;;  %v290_v29 = vadd.f32 %v385_v3, %v265_v19 }
 0x104   :  { %v521_v24 = vpop.f32.mrb[6].mxu0  ;;  %v164_v25 = vpop.f32.mrb[7].mxu1  ;;  %v289_v26 = vadd.f32 %v385_v3, %v260_v21 }
 0x105   :  { %v275_v27 = vadd.f32 %v521_v24, %v477_v22  ;;  %v269_v28 = vpop.f32.mrb[7].mxu0  ;;  %297 = vmax.xlane.f32.xlu1 %v287_v23 }
 0x106   :  { %v270_v30 = vadd.f32 %v269_v28, %v164_v25  ;;  %301 = vmax.xlane.f32.xlu0 %v289_v26 }
 0x107   :  { %v292_v32 = vadd.f32 %v385_v3, %v275_v27 }
 0x108   :  { %v291_v31 = vadd.f32 %v385_v3, %v270_v30 }
 0x109   :  { %303 = vmax.xlane.f32.xlu1 %v290_v29 }
 0x10a   :  { %305 = vmax.xlane.f32.xlu0 %v291_v31 }
 0x10d   :  { %307 = vmax.xlane.f32.xlu1 %v292_v32 }
 0x18a   :  { %v296_v33 = vpop.xlane.xlu0 %295 }
 0x18b   :  { %v803_v34 = vsub.f32 %v286_v8, %v296_v33 }
 0x18d   :  { %v319_v35 = vmul.f32 1.442695, %v803_v34 }
 0x18e   :  { %v300_v36 = vpop.xlane.xlu1 %299  ;;  %v294_v37 = vpop.xlane.xlu0 %293 }
 0x18f   :  { %594 = vpow2.f32 %v319_v35  ;;  %v806_v38 = vsub.f32 %v288_v15, %v300_v36  ;;  %v808_v39 = vsub.f32 %v285_v16, %v294_v37 }
 0x191   :  { %v323_v40 = vmul.f32 1.442695, %v806_v38  ;;  %v317_v41 = vmul.f32 1.442695, %v808_v39 }
 0x192   :  { %v298_v42 = vpop.xlane.xlu1 %297 }
 0x193   :  { %596 = vpow2.f32 %v323_v40  ;;  %v812_v43 = vsub.f32 %v287_v23, %v298_v42  ;;  %v302_v44 = vpop.xlane.xlu0 %301 }
 0x194   :  { %598 = vpow2.f32 %v317_v41  ;;  %v814_v45 = vsub.f32 %v289_v26, %v302_v44 }
 0x195   :  { %v321_v46 = vmul.f32 1.442695, %v812_v43 }
 0x196   :  { %v304_v47 = vpop.xlane.xlu1 %303  ;;  %v325_v50 = vmul.f32 1.442695, %v814_v45 }
 0x197   :  { %600 = vpow2.f32 %v321_v46  ;;  %v817_v48 = vsub.f32 %v290_v29, %v304_v47  ;;  %v306_v49 = vpop.xlane.xlu0 %305 }
 0x198   :  { %v820_v51 = vsub.f32 %v291_v31, %v306_v49 }
 0x199   :  { %v595_v52 = vpop.eup %594  ;;  %v327_v53 = vmul.f32 1.442695, %v817_v48 }
 0x19a   :  { %335 = vadd.xlane.f32.xlu1 %v595_v52  ;;  %v308_v54 = vpop.xlane.xlu1 %307  ;;  %v329_v56 = vmul.f32 1.442695, %v820_v51 }
 0x19b   :  { %602 = vpow2.f32 %v327_v53  ;;  %v823_v55 = vsub.f32 %v292_v32, %v308_v54 }
 0x19c   :  { %604 = vpow2.f32 %v325_v50 }
 0x19d   :  { %v597_v57 = vpop.eup %596  ;;  %v331_v58 = vmul.f32 1.442695, %v823_v55 }
 0x19e   :  { %v599_v59 = vpop.eup %598  ;;  %339 = vadd.xlane.f32.xlu1 %v597_v57 }
 0x19f   :  { %606 = vpow2.f32 %v331_v58  ;;  %333 = vadd.xlane.f32.xlu0 %v599_v59 }
 0x1a0   :  { %608 = vpow2.f32 %v329_v56 }
 0x1a1   :  { %v601_v60 = vpop.eup %600 }
 0x1a3   :  { %337 = vadd.xlane.f32.xlu0 %v601_v60 }
 0x1a5   :  { %v603_v61 = vpop.eup %602 }
 0x1a6   :  { %v605_v62 = vpop.eup %604  ;;  %343 = vadd.xlane.f32.xlu1 %v603_v61 }
 0x1a7   :  { %341 = vadd.xlane.f32.xlu0 %v605_v62 }
 0x1a9   :  { %v607_v63 = vpop.eup %606 }
 0x1aa   :  { %v609_v0 = vpop.eup %608  ;;  %347 = vadd.xlane.f32.xlu1 %v607_v63 }
 0x1ab   :  { %345 = vadd.xlane.f32.xlu0 %v609_v0 }
 0x227   :  { %v336_v1 = vpop.xlane.xlu1 %335 }
 0x228   :  { %610 = vlog2.f32 %v336_v1 }
 0x22b   :  { %v340_v2 = vpop.xlane.xlu1 %339 }
 0x22c   :  { %612 = vlog2.f32 %v340_v2  ;;  %v334_v3 = vpop.xlane.xlu0 %333 }
 0x22d   :  { %614 = vlog2.f32 %v334_v3 }
 0x230   :  { %v338_v4 = vpop.xlane.xlu0 %337 }
 0x231   :  { %616 = vlog2.f32 %v338_v4 }
 0x232   :  { %v611_v5 = vpop.eup %610 }
 0x233   :  { %v352_v6 = vmul.f32 0.6931472, %v611_v5  ;;  %v344_v7 = vpop.xlane.xlu1 %343 }
 0x234   :  { %618 = vlog2.f32 %v344_v7  ;;  %v342_v8 = vpop.xlane.xlu0 %341 }
 0x235   :  { %v366_v9 = vsub.f32 %v803_v34, %v352_v6  ;;  %620 = vlog2.f32 %v342_v8 }
 0x236   :  { %v613_v10 = vpop.eup %612 }
 0x237   :  { %v615_v11 = vpop.eup %614  ;;  %374 = vst [vmem:[%s864_s5 + $0x8] sm:$0xff] %v366_v9  ;;  %v356_v12 = vmul.f32 0.6931472, %v613_v10  ;;  %v348_v13 = vpop.xlane.xlu1 %347 }
 0x238   :  { %v350_v14 = vmul.f32 0.6931472, %v615_v11  ;;  %622 = vlog2.f32 %v348_v13  ;;  %v346_v15 = vpop.xlane.xlu0 %345 }
 0x239   :  { %v368_v16 = vsub.f32 %v806_v38, %v356_v12  ;;  %624 = vlog2.f32 %v346_v15 }
 0x23a   :  { %v365_v17 = vsub.f32 %v808_v39, %v350_v14 }
 0x23b   :  { %v617_v18 = vpop.eup %616  ;;  %376 = vst [vmem:[%s864_s5 + $0x18] sm:$0xff] %v368_v16 }
 0x23c   :  { %373 = vst [vmem:[%s864_s5] sm:$0xff] %v365_v17  ;;  %v354_v19 = vmul.f32 0.6931472, %v617_v18 }
 0x23e   :  { %v619_v20 = vpop.eup %618  ;;  %v367_v21 = vsub.f32 %v812_v43, %v354_v19 }
 0x23f   :  { %v621_v22 = vpop.eup %620  ;;  %v360_v23 = vmul.f32 0.6931472, %v619_v20 }
 0x240   :  { %375 = vst [vmem:[%s864_s5 + $0x10] sm:$0xff] %v367_v21  ;;  %v358_v24 = vmul.f32 0.6931472, %v621_v22 }
 0x241   :  { %v370_v25 = vsub.f32 %v817_v48, %v360_v23 }
 0x242   :  { %v623_v26 = vpop.eup %622  ;;  %v369_v27 = vsub.f32 %v814_v45, %v358_v24 }
 0x243   :  { %v625_v28 = vpop.eup %624  ;;  %378 = vst [vmem:[%s864_s5 + $0x28] sm:$0xff] %v370_v25  ;;  %v364_v29 = vmul.f32 0.6931472, %v623_v26 }
 0x244   :  { %377 = vst [vmem:[%s864_s5 + $0x20] sm:$0xff] %v369_v27  ;;  %v362_v30 = vmul.f32 0.6931472, %v625_v28 }
 0x245   :  { %v372_v31 = vsub.f32 %v823_v55, %v364_v29 }
 0x246   :  { %v371_v32 = vsub.f32 %v820_v51, %v362_v30 }
 0x247   :  { %380 = vst [vmem:[%s864_s5 + $0x38] sm:$0xff] %v372_v31 }
 0x248   :  { %379 = vst [vmem:[%s864_s5 + $0x30] sm:$0xff] %v371_v32 }

// kernel: rnn_forward_sequence.2
= control target key start
LH: loop header
LB: loop body
LE: loop exit
PB: predicated region body
PF: predicated region fallthrough
CT: control target
= control target key end

     0   :  { %12 = vsyncpa [#allocation3], 0  ;;  %s3004_s0 = inlined_call_operand.vmem [shape: f32[8,8,128], index: 0, kind: input, shape index: {}]   ;;  %s3005_s1 = inlined_call_operand.vmem [shape: f32[8,128], index: 1, kind: input, shape index: {}]   ;;  %s3006_s2 = inlined_call_operand.hbm [shape: f32[128,128], index: 2, kind: input, shape index: {}]   ;;  %s3007_s3 = inlined_call_operand.hbm [shape: f32[128,128], index: 3, kind: input, shape index: {}]   ;;  %s3008_s4 = inlined_call_operand.vmem [shape: f32[1,128], index: 4, kind: input, shape index: {}]   ;;  %s3009_s5 = inlined_call_operand.vmem [shape: f32[8,8,128], index: 5, kind: output, shape index: {0}]   ;;  %s3010_s6 = inlined_call_operand.vmem [shape: f32[8,128], index: 6, kind: output, shape index: {1}]  }
   0x1   :  { %13 = vsyncpa [#allocation5], 0  ;;  %s2551_s21 = smov [#allocation2]   ;;  %s2503_s25 = scalar_lea.hbm %s3006_s2, 2048 }
   0x2   :  { %s23_s22 = sshll.u32 %s2551_s21, 4  ;;  %p2504_p0 = scmp.ne.s32.totalorder %s3006_s2, %s2503_s25  ;;  %s24_s22 = int_to_ptr.vmem [resolvable:$true] %s23_s22 }
   0x3   :  { %p2507_p1 = scmp.lt.u32.totalorder %s2503_s25, %s3006_s2 }
   0x5   :  { %p2509_p2 = pnand %p2507_p1, %p2504_p0 }
   0x7   :  { %2512 = shalt.err (!%p2509_p2)
}
   0x8   :  { %s2513_s30 = scalar_lea.vmem %s24_s22, 2048  ;;  %p2518_p4 = scmp.lt.s32.totalorder %s24_s22, %s24_s22 }
   0x9   :  { %p2514_p3 = scmp.ne.s32.totalorder %s24_s22, %s2513_s30  ;;  %p2519_p5 = scmp.lt.s32.totalorder %s2513_s30, %s2513_s30 }
   0xb   :  { %p2520_p6 = por %p2519_p5, %p2518_p4 }
   0xd   :  { %p2521_p7 = pnand %p2520_p6, %p2514_p3 }
   0xf   :  { %2524 = shalt.err (!%p2521_p7)
}
  0x10   :  { %s2552_s7 = smov 128   ;;  %s2553_s8 = smov 8  }
  0x11   :  { %29 = dma.hbm_to_vmem [thread:$0]  %s3006_s2, 2048, %s24_s22, [#allocation3], %s2552_s7, %s2552_s7, %s2553_s8  }
  0x12   :  { %s2554_s11 = smov [#allocation4]   ;;  %s2525_s15 = scalar_lea.hbm %s3007_s3, 2048 }
  0x13   :  { %s35_s12 = sshll.u32 %s2554_s11, 4  ;;  %p2526_p8 = scmp.ne.s32.totalorder %s3007_s3, %s2525_s15  ;;  %s36_s12 = int_to_ptr.vmem [resolvable:$true] %s35_s12 }
  0x14   :  { %p2529_p9 = scmp.lt.u32.totalorder %s2525_s15, %s3007_s3 }
  0x16   :  { %p2531_p10 = pnand %p2529_p9, %p2526_p8 }
  0x18   :  { %2534 = shalt.err (!%p2531_p10)
}
  0x19   :  { %s2535_s20 = scalar_lea.vmem %s36_s12, 2048  ;;  %p2540_p12 = scmp.lt.s32.totalorder %s36_s12, %s36_s12 }
  0x1a   :  { %p2536_p11 = scmp.ne.s32.totalorder %s36_s12, %s2535_s20  ;;  %p2541_p13 = scmp.lt.s32.totalorder %s2535_s20, %s2535_s20 }
  0x1c   :  { %p2542_p0 = por %p2541_p13, %p2540_p12 }
  0x1e   :  { %p2543_p1 = pnand %p2542_p0, %p2536_p11 }
  0x20   :  { %2546 = shalt.err (!%p2543_p1)
}
  0x21   :  { %41 = dma.hbm_to_vmem [thread:$0]  %s3007_s3, 2048, %s36_s12, [#allocation5], %s2552_s7, %s2552_s7, %s2553_s8  }
  0x22   :  { %2547 = dma.done.wait [#allocation3], 2048  }
  0x23   :  { %2548 = vsyncadd [#allocation3], 4294965248 }
  0x24   :  { %2549 = dma.done.wait [#allocation5], 2048  }
  0x25   :  { %2550 = vsyncadd [#allocation5], 4294965248  ;;  %v2555_v0 = vmov 0.0|0.0   ;;  %vm2556_vm0 = vmmov 0   ;;  %v2557_v1 = vmov 0.0   ;;  %v72_v2 = vld [vmem:[#allocation4] sm:$0xff] }
  0x26   :  { %2112 = vmatprep.subr.bf16.mxu0 %v2555_v0  ;;  %2136 = vmatprep.subr.bf16.mxu1 %v2555_v0  ;;  %v73_v3 = vld [vmem:[#allocation4 + $0x8] sm:$0xff]  ;;  %v56_v4 = vld [vmem:[#allocation2] sm:$0xff]  ;;  %v74_v7 = vld [vmem:[#allocation4 + $0x10] sm:$0xff] }
  0x27   :  { %1584 = vmatprep.mubr.msk.f32.mxu0 %vm2556_vm0, %v2557_v1  ;;  %1619 = vmatprep.mubr.msk.f32.mxu1 %vm2556_vm0, %v2557_v1  ;;  %v2623_v5 = vpack.c.bf16 %v73_v3, %v72_v2  ;;  %v57_v6 = vld [vmem:[#allocation2 + $0x8] sm:$0xff]  ;;  %v75_v8 = vld [vmem:[#allocation4 + $0x18] sm:$0xff]  ;;  %v58_v10 = vld [vmem:[#allocation2 + $0x10] sm:$0xff] }
  0x28   :  { %v2625_v9 = vpack.c.bf16 %v57_v6, %v56_v4  ;;  %v59_v11 = vld [vmem:[#allocation2 + $0x18] sm:$0xff]  ;;  %v2628_v12 = vpack.c.bf16 %v75_v8, %v74_v7  ;;  %v76_v14 = vld [vmem:[#allocation4 + $0x20] sm:$0xff]  ;;  %v77_v15 = vld [vmem:[#allocation4 + $0x28] sm:$0xff] }
  0x29   :  { %2114 = vmatpush3.bf16.msra.mxu0 %v2623_v5  ;;  %v2632_v13 = vpack.c.bf16 %v59_v11, %v58_v10  ;;  %v60_v16 = vld [vmem:[#allocation2 + $0x20] sm:$0xff]  ;;  %v61_v17 = vld [vmem:[#allocation2 + $0x28] sm:$0xff]  ;;  %v2636_v18 = vpack.c.bf16 %v77_v15, %v76_v14  ;;  %v78_v20 = vld [vmem:[#allocation4 + $0x30] sm:$0xff] }
  0x2a   :  { %2138 = vmatpush3.bf16.msra.mxu1 %v2625_v9  ;;  %2115 = vmatprep.subr.bf16.mxu0 %v2555_v0  ;;  %v2640_v19 = vpack.c.bf16 %v61_v17, %v60_v16  ;;  %v79_v21 = vld [vmem:[#allocation4 + $0x38] sm:$0xff]  ;;  %v62_v22 = vld [vmem:[#allocation2 + $0x30] sm:$0xff]  ;;  %v54_v24 = vld [vmem:[%s3005_s1] sm:$0xff] }
  0x2b   :  { %2139 = vmatprep.subr.bf16.mxu1 %v2555_v0  ;;  %v63_v23 = vld [vmem:[#allocation2 + $0x38] sm:$0xff]  ;;  %v2647_v25 = vpack.c.bf16 %v79_v21, %v78_v20  ;;  %90 = vst [vmem:[%s3009_s5] sm:$0xff] %v54_v24  ;;  %v80_v27 = vld [vmem:[#allocation4 + $0x40] sm:$0xff]  ;;  %v81_v28 = vld [vmem:[#allocation4 + $0x48] sm:$0xff] }
  0x2c   :  { %v2654_v26 = vpack.c.bf16 %v63_v23, %v62_v22  ;;  %v64_v29 = vld [vmem:[#allocation2 + $0x40] sm:$0xff]  ;;  %v65_v30 = vld [vmem:[#allocation2 + $0x48] sm:$0xff]  ;;  %v2658_v31 = vpack.c.bf16 %v81_v28, %v80_v27  ;;  %v82_v33 = vld [vmem:[#allocation4 + $0x50] sm:$0xff] }
  0x2d   :  { %2117 = vmatpush3.bf16.msra.mxu0 %v2628_v12  ;;  %v2662_v32 = vpack.c.bf16 %v65_v30, %v64_v29  ;;  %v83_v34 = vld [vmem:[#allocation4 + $0x58] sm:$0xff]  ;;  %v66_v35 = vld [vmem:[#allocation2 + $0x50] sm:$0xff]  ;;  %v84_v39 = vld [vmem:[#allocation4 + $0x60] sm:$0xff] }
  0x2e   :  { %2141 = vmatpush3.bf16.msra.mxu1 %v2632_v13  ;;  %2118 = vmatprep.subr.bf16.mxu0 %v2555_v0  ;;  %v67_v36 = vld [vmem:[#allocation2 + $0x58] sm:$0xff]  ;;  %v2666_v37 = vpack.c.bf16 %v83_v34, %v82_v33  ;;  %v85_v40 = vld [vmem:[#allocation4 + $0x68] sm:$0xff]  ;;  %v68_v41 = vld [vmem:[#allocation2 + $0x60] sm:$0xff] }
  0x2f   :  { %2142 = vmatprep.subr.bf16.mxu1 %v2555_v0  ;;  %v2670_v38 = vpack.c.bf16 %v67_v36, %v66_v35  ;;  %v69_v42 = vld [vmem:[#allocation2 + $0x68] sm:$0xff]  ;;  %v2674_v43 = vpack.c.bf16 %v85_v40, %v84_v39  ;;  %v86_v45 = vld [vmem:[#allocation4 + $0x70] sm:$0xff]  ;;  %v87_v46 = vld [vmem:[#allocation4 + $0x78] sm:$0xff] }
  0x30   :  { %v2678_v44 = vpack.c.bf16 %v69_v42, %v68_v41  ;;  %v70_v47 = vld [vmem:[#allocation2 + $0x70] sm:$0xff]  ;;  %v71_v48 = vld [vmem:[#allocation2 + $0x78] sm:$0xff]  ;;  %v2682_v49 = vpack.c.bf16 %v87_v46, %v86_v45  ;;  %v91_v51 = vld [vmem:[%s3004_s0] sm:$0xff] }
  0x31   :  { %2120 = vmatpush3.bf16.msra.mxu0 %v2636_v18  ;;  %v2686_v50 = vpack.c.bf16 %v71_v48, %v70_v47  ;;  %v1267_v52 = vld [vmem:[%s3004_s0 + $0x8] sm:$0xff]  ;;  %v2756_v54 = vld [vmem:[%s3008_s4] ss:$0 sm:$0xff]  ;;  %v1269_v62 = vld [vmem:[%s3004_s0 + $0x10] sm:$0xff] }
  0x32   :  { %2144 = vmatpush3.bf16.msra.mxu1 %v2640_v19  ;;  %2121 = vmatprep.subr.bf16.mxu0 %v2555_v0  ;;  %v1271_v8 = vld [vmem:[%s3004_s0 + $0x18] sm:$0xff]  ;;  %v1273_v20 = vld [vmem:[%s3004_s0 + $0x20] sm:$0xff]  ;;  %v1275_v29 = vld [vmem:[%s3004_s0 + $0x28] sm:$0xff] }
  0x33   :  { %2145 = vmatprep.subr.bf16.mxu1 %v2555_v0  ;;  %v1277_v40 = vld [vmem:[%s3004_s0 + $0x30] sm:$0xff] }
  0x35   :  { %2123 = vmatpush3.bf16.msra.mxu0 %v2647_v25 }
  0x36   :  { %2147 = vmatpush3.bf16.msra.mxu1 %v2654_v26  ;;  %2124 = vmatprep.subr.bf16.mxu0 %v2555_v0 }
  0x37   :  { %2148 = vmatprep.subr.bf16.mxu1 %v2555_v0 }
  0x39   :  { %2126 = vmatpush3.bf16.msra.mxu0 %v2658_v31 }
  0x3a   :  { %2150 = vmatpush3.bf16.msra.mxu1 %v2662_v32  ;;  %2127 = vmatprep.subr.bf16.mxu0 %v2555_v0 }
  0x3b   :  { %2151 = vmatprep.subr.bf16.mxu1 %v2555_v0 }
  0x3d   :  { %2129 = vmatpush3.bf16.msra.mxu0 %v2666_v37 }
  0x3e   :  { %2153 = vmatpush3.bf16.msra.mxu1 %v2670_v38  ;;  %2130 = vmatprep.subr.bf16.mxu0 %v2555_v0 }
  0x3f   :  { %2154 = vmatprep.subr.bf16.mxu1 %v2555_v0 }
  0x41   :  { %2132 = vmatpush3.bf16.msra.mxu0 %v2674_v43 }
  0x42   :  { %2156 = vmatpush3.bf16.msra.mxu1 %v2678_v44  ;;  %2133 = vmatprep.subr.bf16.mxu0 %v2555_v0 }
  0x43   :  { %2157 = vmatprep.subr.bf16.mxu1 %v2555_v0 }
  0x45   :  { %2135 = vmatpush3.bf16.msra.mxu0 %v2682_v49 }
  0x46   :  { %2159 = vmatpush3.bf16.msra.mxu1 %v2686_v50  ;;  %2160 = vmatprep.subr.bf16.mxu0 %v2555_v0 }
  0x47   :  { %2184 = vmatprep.subr.bf16.mxu1 %v2555_v0 }
  0x48   :  { %1585 = vmatmul.mubr.f32.vlgmr.msra.gmra.mrb[0].mxu0 %v54_v24 }
  0x49   :  { %1620 = vmatmul.mubr.f32.vlgmr.msra.gmra.mrb[0].mxu1 %v91_v51  ;;  %2162 = vmatpush3.bf16.msra.mxu0 %v2623_v5 }
  0x4a   :  { %2186 = vmatpush3.bf16.msra.mxu1 %v2625_v9  ;;  %2163 = vmatprep.subr.bf16.mxu0 %v2555_v0 }
  0x4b   :  { %2187 = vmatprep.subr.bf16.mxu1 %v2555_v0  ;;  %1689 = vmatprep.mubr.msk.f32.mxu1 %vm2556_vm0, %v2557_v1 }
  0x4c   :  { %1654 = vmatprep.mubr.msk.f32.mxu0 %vm2556_vm0, %v2557_v1 }
  0x4d   :  { %2165 = vmatpush3.bf16.msra.mxu0 %v2628_v12 }
  0x4e   :  { %2189 = vmatpush3.bf16.msra.mxu1 %v2632_v13  ;;  %2166 = vmatprep.subr.bf16.mxu0 %v2555_v0 }
  0x4f   :  { %2190 = vmatprep.subr.bf16.mxu1 %v2555_v0 }
  0x51   :  { %2168 = vmatpush3.bf16.msra.mxu0 %v2636_v18 }
  0x52   :  { %2192 = vmatpush3.bf16.msra.mxu1 %v2640_v19  ;;  %2169 = vmatprep.subr.bf16.mxu0 %v2555_v0 }
  0x53   :  { %2193 = vmatprep.subr.bf16.mxu1 %v2555_v0 }
  0x55   :  { %2171 = vmatpush3.bf16.msra.mxu0 %v2647_v25 }
  0x56   :  { %2195 = vmatpush3.bf16.msra.mxu1 %v2654_v26  ;;  %2172 = vmatprep.subr.bf16.mxu0 %v2555_v0 }
  0x57   :  { %2196 = vmatprep.subr.bf16.mxu1 %v2555_v0 }
  0x59   :  { %2174 = vmatpush3.bf16.msra.mxu0 %v2658_v31 }
  0x5a   :  { %2198 = vmatpush3.bf16.msra.mxu1 %v2662_v32  ;;  %2175 = vmatprep.subr.bf16.mxu0 %v2555_v0 }
  0x5b   :  { %2199 = vmatprep.subr.bf16.mxu1 %v2555_v0 }
  0x5d   :  { %2177 = vmatpush3.bf16.msra.mxu0 %v2666_v37 }
  0x5e   :  { %2201 = vmatpush3.bf16.msra.mxu1 %v2670_v38  ;;  %2178 = vmatprep.subr.bf16.mxu0 %v2555_v0 }
  0x5f   :  { %2202 = vmatprep.subr.bf16.mxu1 %v2555_v0 }
  0x61   :  { %2180 = vmatpush3.bf16.msra.mxu0 %v2674_v43 }
  0x62   :  { %2204 = vmatpush3.bf16.msra.mxu1 %v2678_v44  ;;  %2181 = vmatprep.subr.bf16.mxu0 %v2555_v0 }
  0x63   :  { %2205 = vmatprep.subr.bf16.mxu1 %v2555_v0 }
  0x65   :  { %2183 = vmatpush3.bf16.msra.mxu0 %v2682_v49 }
  0x66   :  { %2207 = vmatpush3.bf16.msra.mxu1 %v2686_v50  ;;  %2208 = vmatprep.subr.bf16.mxu0 %v2555_v0 }
  0x67   :  { %2232 = vmatprep.subr.bf16.mxu1 %v2555_v0 }
  0x69   :  { %1690 = vmatmul.mubr.f32.vlgmr.msra.gmra.mrb[2].mxu1 %v1267_v52 }
  0x6a   :  { %2234 = vmatpush3.bf16.msra.mxu1 %v2625_v9  ;;  %1759 = vmatprep.mubr.msk.f32.mxu1 %vm2556_vm0, %v2557_v1 }
  0x6b   :  { %2235 = vmatprep.subr.bf16.mxu1 %v2555_v0 }
  0x6e   :  { %2237 = vmatpush3.bf16.msra.mxu1 %v2632_v13 }
  0x6f   :  { %2238 = vmatprep.subr.bf16.mxu1 %v2555_v0 }
  0x72   :  { %2240 = vmatpush3.bf16.msra.mxu1 %v2640_v19 }
  0x73   :  { %2241 = vmatprep.subr.bf16.mxu1 %v2555_v0 }
  0x76   :  { %2243 = vmatpush3.bf16.msra.mxu1 %v2654_v26 }
  0x77   :  { %2244 = vmatprep.subr.bf16.mxu1 %v2555_v0 }
  0x7a   :  { %2246 = vmatpush3.bf16.msra.mxu1 %v2662_v32 }
  0x7b   :  { %2247 = vmatprep.subr.bf16.mxu1 %v2555_v0 }
  0x7e   :  { %2249 = vmatpush3.bf16.msra.mxu1 %v2670_v38 }
  0x7f   :  { %2250 = vmatprep.subr.bf16.mxu1 %v2555_v0 }
  0x82   :  { %2252 = vmatpush3.bf16.msra.mxu1 %v2678_v44 }
  0x83   :  { %2253 = vmatprep.subr.bf16.mxu1 %v2555_v0 }
  0x86   :  { %2255 = vmatpush3.bf16.msra.mxu1 %v2686_v50 }
  0x87   :  { %2280 = vmatprep.subr.bf16.mxu1 %v2555_v0 }
  0x89   :  { %1760 = vmatmul.mubr.f32.vlgmr.msra.gmra.mrb[4].mxu1 %v1269_v62 }
  0x8a   :  { %2282 = vmatpush3.bf16.msra.mxu1 %v2625_v9  ;;  %1829 = vmatprep.mubr.msk.f32.mxu1 %vm2556_vm0, %v2557_v1 }
  0x8b   :  { %2283 = vmatprep.subr.bf16.mxu1 %v2555_v0 }
  0x8e   :  { %2285 = vmatpush3.bf16.msra.mxu1 %v2632_v13 }
  0x8f   :  { %2286 = vmatprep.subr.bf16.mxu1 %v2555_v0 }
  0x92   :  { %2288 = vmatpush3.bf16.msra.mxu1 %v2640_v19 }
  0x93   :  { %2289 = vmatprep.subr.bf16.mxu1 %v2555_v0 }
  0x96   :  { %2291 = vmatpush3.bf16.msra.mxu1 %v2654_v26 }
  0x97   :  { %2292 = vmatprep.subr.bf16.mxu1 %v2555_v0 }
  0x9a   :  { %2294 = vmatpush3.bf16.msra.mxu1 %v2662_v32 }
  0x9b   :  { %2295 = vmatprep.subr.bf16.mxu1 %v2555_v0 }
  0x9e   :  { %2297 = vmatpush3.bf16.msra.mxu1 %v2670_v38 }
  0x9f   :  { %2298 = vmatprep.subr.bf16.mxu1 %v2555_v0 }
  0xa2   :  { %2300 = vmatpush3.bf16.msra.mxu1 %v2678_v44 }
  0xa3   :  { %2301 = vmatprep.subr.bf16.mxu1 %v2555_v0 }
  0xa6   :  { %2303 = vmatpush3.bf16.msra.mxu1 %v2686_v50 }
  0xa7   :  { %2328 = vmatprep.subr.bf16.mxu1 %v2555_v0 }
  0xa9   :  { %1830 = vmatmul.mubr.f32.vlgmr.msra.gmra.mrb[6].mxu1 %v1271_v8 }
  0xaa   :  { %2330 = vmatpush3.bf16.msra.mxu1 %v2625_v9  ;;  %1899 = vmatprep.mubr.msk.f32.mxu1 %vm2556_vm0, %v2557_v1 }
  0xab   :  { %2331 = vmatprep.subr.bf16.mxu1 %v2555_v0 }
  0xae   :  { %2333 = vmatpush3.bf16.msra.mxu1 %v2632_v13 }
  0xaf   :  { %2334 = vmatprep.subr.bf16.mxu1 %v2555_v0 }
  0xb2   :  { %2336 = vmatpush3.bf16.msra.mxu1 %v2640_v19 }
  0xb3   :  { %2337 = vmatprep.subr.bf16.mxu1 %v2555_v0 }
  0xb6   :  { %2339 = vmatpush3.bf16.msra.mxu1 %v2654_v26 }
  0xb7   :  { %2340 = vmatprep.subr.bf16.mxu1 %v2555_v0 }
  0xba   :  { %2342 = vmatpush3.bf16.msra.mxu1 %v2662_v32 }
  0xbb   :  { %2343 = vmatprep.subr.bf16.mxu1 %v2555_v0 }
  0xbe   :  { %2345 = vmatpush3.bf16.msra.mxu1 %v2670_v38 }
  0xbf   :  { %2346 = vmatprep.subr.bf16.mxu1 %v2555_v0 }
  0xc2   :  { %2348 = vmatpush3.bf16.msra.mxu1 %v2678_v44 }
  0xc3   :  { %2349 = vmatprep.subr.bf16.mxu1 %v2555_v0 }
  0xc6   :  { %2351 = vmatpush3.bf16.msra.mxu1 %v2686_v50 }
  0xc7   :  { %2376 = vmatprep.subr.bf16.mxu1 %v2555_v0 }
  0xc9   :  { %1900 = vmatmul.mubr.f32.vlgmr.msra.gmra.mrb[8].mxu1 %v1273_v20 }
  0xca   :  { %2378 = vmatpush3.bf16.msra.mxu1 %v2625_v9  ;;  %1969 = vmatprep.mubr.msk.f32.mxu1 %vm2556_vm0, %v2557_v1 }
  0xcb   :  { %2379 = vmatprep.subr.bf16.mxu1 %v2555_v0 }
  0xce   :  { %2381 = vmatpush3.bf16.msra.mxu1 %v2632_v13 }
  0xcf   :  { %2382 = vmatprep.subr.bf16.mxu1 %v2555_v0 }
  0xd2   :  { %2384 = vmatpush3.bf16.msra.mxu1 %v2640_v19 }
  0xd3   :  { %2385 = vmatprep.subr.bf16.mxu1 %v2555_v0 }
  0xd6   :  { %2387 = vmatpush3.bf16.msra.mxu1 %v2654_v26 }
  0xd7   :  { %2388 = vmatprep.subr.bf16.mxu1 %v2555_v0 }
  0xda   :  { %2390 = vmatpush3.bf16.msra.mxu1 %v2662_v32 }
  0xdb   :  { %2391 = vmatprep.subr.bf16.mxu1 %v2555_v0 }
  0xde   :  { %2393 = vmatpush3.bf16.msra.mxu1 %v2670_v38 }
  0xdf   :  { %2394 = vmatprep.subr.bf16.mxu1 %v2555_v0 }
  0xe2   :  { %2396 = vmatpush3.bf16.msra.mxu1 %v2678_v44 }
  0xe3   :  { %2397 = vmatprep.subr.bf16.mxu1 %v2555_v0 }
  0xe6   :  { %2399 = vmatpush3.bf16.msra.mxu1 %v2686_v50 }
  0xe7   :  { %2424 = vmatprep.subr.bf16.mxu1 %v2555_v0 }
  0xe9   :  { %1970 = vmatmul.mubr.f32.vlgmr.msra.gmra.mrb[10].mxu1 %v1275_v29 }
  0xea   :  { %2426 = vmatpush3.bf16.msra.mxu1 %v2625_v9  ;;  %2039 = vmatprep.mubr.msk.f32.mxu1 %vm2556_vm0, %v2557_v1 }
  0xeb   :  { %2427 = vmatprep.subr.bf16.mxu1 %v2555_v0 }
  0xee   :  { %2429 = vmatpush3.bf16.msra.mxu1 %v2632_v13 }
  0xef   :  { %2430 = vmatprep.subr.bf16.mxu1 %v2555_v0 }
  0xf2   :  { %2432 = vmatpush3.bf16.msra.mxu1 %v2640_v19 }
  0xf3   :  { %2433 = vmatprep.subr.bf16.mxu1 %v2555_v0 }
  0xf6   :  { %2435 = vmatpush3.bf16.msra.mxu1 %v2654_v26 }
  0xf7   :  { %2436 = vmatprep.subr.bf16.mxu1 %v2555_v0 }
  0xfa   :  { %2438 = vmatpush3.bf16.msra.mxu1 %v2662_v32 }
  0xfb   :  { %2439 = vmatprep.subr.bf16.mxu1 %v2555_v0 }
  0xfe   :  { %2441 = vmatpush3.bf16.msra.mxu1 %v2670_v38 }
  0xff   :  { %2442 = vmatprep.subr.bf16.mxu1 %v2555_v0 }
 0x102   :  { %2444 = vmatpush3.bf16.msra.mxu1 %v2678_v44 }
 0x103   :  { %2445 = vmatprep.subr.bf16.mxu1 %v2555_v0 }
 0x106   :  { %2447 = vmatpush3.bf16.msra.mxu1 %v2686_v50 }
 0x107   :  { %2472 = vmatprep.subr.bf16.mxu1 %v2555_v0 }
 0x109   :  { %2040 = vmatmul.mubr.f32.vlgmr.msra.gmra.mrb[12].mxu1 %v1277_v40 }
 0x10a   :  { %2474 = vmatpush3.bf16.msra.mxu1 %v2625_v9  ;;  %2109 = vmatprep.mubr.msk.f32.mxu1 %vm2556_vm0, %v2557_v1 }
 0x10b   :  { %2475 = vmatprep.subr.bf16.mxu1 %v2555_v0 }
 0x10e   :  { %2477 = vmatpush3.bf16.msra.mxu1 %v2632_v13 }
 0x10f   :  { %2478 = vmatprep.subr.bf16.mxu1 %v2555_v0 }
 0x112   :  { %2480 = vmatpush3.bf16.msra.mxu1 %v2640_v19 }
 0x113   :  { %2481 = vmatprep.subr.bf16.mxu1 %v2555_v0 }
 0x116   :  { %2483 = vmatpush3.bf16.msra.mxu1 %v2654_v26 }
 0x117   :  { %2484 = vmatprep.subr.bf16.mxu1 %v2555_v0 }
 0x11a   :  { %2486 = vmatpush3.bf16.msra.mxu1 %v2662_v32 }
 0x11b   :  { %v158_v53 = vpop.f32.mrb[0].mxu0  ;;  %2487 = vmatprep.subr.bf16.mxu1 %v2555_v0 }
 0x11c   :  { %v228_v55 = vpop.f32.mrb[0].mxu1  ;;  %v1586_v56 = vpop.f32.mrb[1].mxu0 }
 0x11d   :  { %v229_v57 = vadd.f32 %v228_v55, %v158_v53  ;;  %v1621_v58 = vpop.f32.mrb[1].mxu1 }
 0x11e   :  { %2489 = vmatpush3.bf16.msra.mxu1 %v2670_v38 }
 0x11f   :  { %v238_v59 = vadd.f32 %v2756_v54, %v229_v57  ;;  %2490 = vmatprep.subr.bf16.mxu1 %v2555_v0 }
 0x121   :  { %1266 = vst [vmem:[%s3009_s5 + $0x8] sm:$0xff] %v238_v59  ;;  %1655 = vmatmul.mubr.f32.vlgmr.msra.gmra.mrb[2].mxu0 %v238_v59 }
 0x122   :  { %2210 = vmatpush3.bf16.msra.mxu0 %v2623_v5  ;;  %1724 = vmatprep.mubr.msk.f32.mxu0 %vm2556_vm0, %v2557_v1 }
 0x123   :  { %2211 = vmatprep.subr.bf16.mxu0 %v2555_v0  ;;  %2492 = vmatpush3.bf16.msra.mxu1 %v2678_v44 }
 0x124   :  { %2493 = vmatprep.subr.bf16.mxu1 %v2555_v0 }
 0x126   :  { %2213 = vmatpush3.bf16.msra.mxu0 %v2628_v12 }
 0x127   :  { %2214 = vmatprep.subr.bf16.mxu0 %v2555_v0  ;;  %2495 = vmatpush3.bf16.msra.mxu1 %v2686_v50 }
 0x12a   :  { %2216 = vmatpush3.bf16.msra.mxu0 %v2636_v18 }
 0x12b   :  { %2217 = vmatprep.subr.bf16.mxu0 %v2555_v0 }
 0x12e   :  { %2219 = vmatpush3.bf16.msra.mxu0 %v2647_v25 }
 0x12f   :  { %2220 = vmatprep.subr.bf16.mxu0 %v2555_v0 }
 0x132   :  { %2222 = vmatpush3.bf16.msra.mxu0 %v2658_v31 }
 0x133   :  { %2223 = vmatprep.subr.bf16.mxu0 %v2555_v0 }
 0x136   :  { %2225 = vmatpush3.bf16.msra.mxu0 %v2666_v37 }
 0x137   :  { %2226 = vmatprep.subr.bf16.mxu0 %v2555_v0 }
 0x13a   :  { %2228 = vmatpush3.bf16.msra.mxu0 %v2674_v43 }
 0x13b   :  { %2229 = vmatprep.subr.bf16.mxu0 %v2555_v0 }
 0x13c   :  { %v379_v60 = vpop.f32.mrb[2].mxu1 }
 0x13d   :  { %v1691_v61 = vpop.f32.mrb[3].mxu1 }
 0x13e   :  { %2231 = vmatpush3.bf16.msra.mxu0 %v2682_v49 }
 0x13f   :  { %2256 = vmatprep.subr.bf16.mxu0 %v2555_v0 }
 0x15c   :  { %v524_v6 = vpop.f32.mrb[4].mxu1 }
 0x15d   :  { %v1761_v7 = vpop.f32.mrb[5].mxu1 }
 0x17c   :  { %v669_v16 = vpop.f32.mrb[6].mxu1 }
 0x17d   :  { %v1831_v17 = vpop.f32.mrb[7].mxu1 }
 0x19c   :  { %v814_v27 = vpop.f32.mrb[8].mxu1 }
 0x19d   :  { %v1901_v28 = vpop.f32.mrb[9].mxu1 }
 0x1bc   :  { %v959_v36 = vpop.f32.mrb[10].mxu1 }
 0x1bd   :  { %v1971_v39 = vpop.f32.mrb[11].mxu1 }
 0x1f4   :  { %v309_v63 = vpop.f32.mrb[2].mxu0 }
 0x1f5   :  { %v380_v2 = vadd.f32 %v379_v60, %v309_v63  ;;  %v1656_v3 = vpop.f32.mrb[3].mxu0 }
 0x1f7   :  { %v383_v4 = vadd.f32 %v2756_v54, %v380_v2 }
 0x1f9   :  { %1268 = vst [vmem:[%s3009_s5 + $0x10] sm:$0xff] %v383_v4  ;;  %1725 = vmatmul.mubr.f32.vlgmr.msra.gmra.mrb[4].mxu0 %v383_v4 }
 0x1fa   :  { %2258 = vmatpush3.bf16.msra.mxu0 %v2623_v5  ;;  %1794 = vmatprep.mubr.msk.f32.mxu0 %vm2556_vm0, %v2557_v1 }
 0x1fb   :  { %2259 = vmatprep.subr.bf16.mxu0 %v2555_v0 }
 0x1fe   :  { %2261 = vmatpush3.bf16.msra.mxu0 %v2628_v12 }
 0x1ff   :  { %2262 = vmatprep.subr.bf16.mxu0 %v2555_v0 }
 0x202   :  { %2264 = vmatpush3.bf16.msra.mxu0 %v2636_v18 }
 0x203   :  { %2265 = vmatprep.subr.bf16.mxu0 %v2555_v0 }
 0x206   :  { %2267 = vmatpush3.bf16.msra.mxu0 %v2647_v25 }
 0x207   :  { %2268 = vmatprep.subr.bf16.mxu0 %v2555_v0 }
 0x20a   :  { %2270 = vmatpush3.bf16.msra.mxu0 %v2658_v31 }
 0x20b   :  { %2271 = vmatprep.subr.bf16.mxu0 %v2555_v0 }
 0x20e   :  { %2273 = vmatpush3.bf16.msra.mxu0 %v2666_v37 }
 0x20f   :  { %2274 = vmatprep.subr.bf16.mxu0 %v2555_v0 }
 0x212   :  { %2276 = vmatpush3.bf16.msra.mxu0 %v2674_v43 }
 0x213   :  { %2277 = vmatprep.subr.bf16.mxu0 %v2555_v0 }
 0x216   :  { %2279 = vmatpush3.bf16.msra.mxu0 %v2682_v49 }
 0x217   :  { %2304 = vmatprep.subr.bf16.mxu0 %v2555_v0 }
 0x2cc   :  { %v454_v10 = vpop.f32.mrb[4].mxu0 }
 0x2cd   :  { %v525_v11 = vadd.f32 %v524_v6, %v454_v10  ;;  %v1726_v14 = vpop.f32.mrb[5].mxu0 }
 0x2cf   :  { %v528_v15 = vadd.f32 %v2756_v54, %v525_v11 }
 0x2d1   :  { %1270 = vst [vmem:[%s3009_s5 + $0x18] sm:$0xff] %v528_v15  ;;  %1795 = vmatmul.mubr.f32.vlgmr.msra.gmra.mrb[6].mxu0 %v528_v15 }
 0x2d2   :  { %2306 = vmatpush3.bf16.msra.mxu0 %v2623_v5  ;;  %1864 = vmatprep.mubr.msk.f32.mxu0 %vm2556_vm0, %v2557_v1 }
 0x2d3   :  { %2307 = vmatprep.subr.bf16.mxu0 %v2555_v0 }
 0x2d6   :  { %2309 = vmatpush3.bf16.msra.mxu0 %v2628_v12 }
 0x2d7   :  { %2310 = vmatprep.subr.bf16.mxu0 %v2555_v0 }
 0x2da   :  { %2312 = vmatpush3.bf16.msra.mxu0 %v2636_v18 }
 0x2db   :  { %2313 = vmatprep.subr.bf16.mxu0 %v2555_v0 }
 0x2de   :  { %2315 = vmatpush3.bf16.msra.mxu0 %v2647_v25 }
 0x2df   :  { %2316 = vmatprep.subr.bf16.mxu0 %v2555_v0 }
 0x2e2   :  { %2318 = vmatpush3.bf16.msra.mxu0 %v2658_v31 }
 0x2e3   :  { %2319 = vmatprep.subr.bf16.mxu0 %v2555_v0 }
 0x2e6   :  { %2321 = vmatpush3.bf16.msra.mxu0 %v2666_v37 }
 0x2e7   :  { %2322 = vmatprep.subr.bf16.mxu0 %v2555_v0 }
 0x2ea   :  { %2324 = vmatpush3.bf16.msra.mxu0 %v2674_v43 }
 0x2eb   :  { %2325 = vmatprep.subr.bf16.mxu0 %v2555_v0 }
 0x2ee   :  { %2327 = vmatpush3.bf16.msra.mxu0 %v2682_v49 }
 0x2ef   :  { %2352 = vmatprep.subr.bf16.mxu0 %v2555_v0 }
 0x3a4   :  { %v599_v21 = vpop.f32.mrb[6].mxu0 }
 0x3a5   :  { %v670_v22 = vadd.f32 %v669_v16, %v599_v21  ;;  %v1796_v23 = vpop.f32.mrb[7].mxu0 }
 0x3a7   :  { %v673_v24 = vadd.f32 %v2756_v54, %v670_v22 }
 0x3a9   :  { %1272 = vst [vmem:[%s3009_s5 + $0x20] sm:$0xff] %v673_v24  ;;  %1865 = vmatmul.mubr.f32.vlgmr.msra.gmra.mrb[8].mxu0 %v673_v24 }
 0x3aa   :  { %2354 = vmatpush3.bf16.msra.mxu0 %v2623_v5  ;;  %1934 = vmatprep.mubr.msk.f32.mxu0 %vm2556_vm0, %v2557_v1 }
 0x3ab   :  { %2355 = vmatprep.subr.bf16.mxu0 %v2555_v0 }
 0x3ae   :  { %2357 = vmatpush3.bf16.msra.mxu0 %v2628_v12 }
 0x3af   :  { %2358 = vmatprep.subr.bf16.mxu0 %v2555_v0 }
 0x3b2   :  { %2360 = vmatpush3.bf16.msra.mxu0 %v2636_v18 }
 0x3b3   :  { %2361 = vmatprep.subr.bf16.mxu0 %v2555_v0 }
 0x3b6   :  { %2363 = vmatpush3.bf16.msra.mxu0 %v2647_v25 }
 0x3b7   :  { %2364 = vmatprep.subr.bf16.mxu0 %v2555_v0 }
 0x3ba   :  { %2366 = vmatpush3.bf16.msra.mxu0 %v2658_v31 }
 0x3bb   :  { %2367 = vmatprep.subr.bf16.mxu0 %v2555_v0 }
 0x3be   :  { %2369 = vmatpush3.bf16.msra.mxu0 %v2666_v37 }
 0x3bf   :  { %2370 = vmatprep.subr.bf16.mxu0 %v2555_v0 }
 0x3c2   :  { %2372 = vmatpush3.bf16.msra.mxu0 %v2674_v43 }
 0x3c3   :  { %2373 = vmatprep.subr.bf16.mxu0 %v2555_v0 }
 0x3c6   :  { %2375 = vmatpush3.bf16.msra.mxu0 %v2682_v49 }
 0x3c7   :  { %2400 = vmatprep.subr.bf16.mxu0 %v2555_v0 }
 0x47c   :  { %v744_v30 = vpop.f32.mrb[8].mxu0 }
 0x47d   :  { %v815_v33 = vadd.f32 %v814_v27, %v744_v30  ;;  %v1866_v34 = vpop.f32.mrb[9].mxu0 }
 0x47f   :  { %v818_v35 = vadd.f32 %v2756_v54, %v815_v33 }
 0x481   :  { %1274 = vst [vmem:[%s3009_s5 + $0x28] sm:$0xff] %v818_v35  ;;  %1935 = vmatmul.mubr.f32.vlgmr.msra.gmra.mrb[10].mxu0 %v818_v35 }
 0x482   :  { %2402 = vmatpush3.bf16.msra.mxu0 %v2623_v5  ;;  %2004 = vmatprep.mubr.msk.f32.mxu0 %vm2556_vm0, %v2557_v1 }
 0x483   :  { %2403 = vmatprep.subr.bf16.mxu0 %v2555_v0 }
 0x486   :  { %2405 = vmatpush3.bf16.msra.mxu0 %v2628_v12 }
 0x487   :  { %2406 = vmatprep.subr.bf16.mxu0 %v2555_v0 }
 0x48a   :  { %2408 = vmatpush3.bf16.msra.mxu0 %v2636_v18 }
 0x48b   :  { %2409 = vmatprep.subr.bf16.mxu0 %v2555_v0 }
 0x48e   :  { %2411 = vmatpush3.bf16.msra.mxu0 %v2647_v25 }
 0x48f   :  { %2412 = vmatprep.subr.bf16.mxu0 %v2555_v0 }
 0x492   :  { %2414 = vmatpush3.bf16.msra.mxu0 %v2658_v31 }
 0x493   :  { %2415 = vmatprep.subr.bf16.mxu0 %v2555_v0 }
 0x496   :  { %2417 = vmatpush3.bf16.msra.mxu0 %v2666_v37 }
 0x497   :  { %2418 = vmatprep.subr.bf16.mxu0 %v2555_v0 }
 0x49a   :  { %2420 = vmatpush3.bf16.msra.mxu0 %v2674_v43 }
 0x49b   :  { %2421 = vmatprep.subr.bf16.mxu0 %v2555_v0 }
 0x49e   :  { %2423 = vmatpush3.bf16.msra.mxu0 %v2682_v49 }
 0x49f   :  { %2448 = vmatprep.subr.bf16.mxu0 %v2555_v0 }
 0x554   :  { %v889_v9 = vpop.f32.mrb[10].mxu0 }
 0x555   :  { %v960_v13 = vadd.f32 %v959_v36, %v889_v9  ;;  %v1936_v19 = vpop.f32.mrb[11].mxu0 }
 0x557   :  { %v963_v26 = vadd.f32 %v2756_v54, %v960_v13 }
 0x559   :  { %1276 = vst [vmem:[%s3009_s5 + $0x30] sm:$0xff] %v963_v26  ;;  %2005 = vmatmul.mubr.f32.vlgmr.msra.gmra.mrb[12].mxu0 %v963_v26 }
 0x55a   :  { %2450 = vmatpush3.bf16.msra.mxu0 %v2623_v5  ;;  %2074 = vmatprep.mubr.msk.f32.mxu0 %vm2556_vm0, %v2557_v1  ;;  %v1104_v1 = vpop.f32.mrb[12].mxu1 }
 0x55b   :  { %2451 = vmatprep.subr.bf16.mxu0 %v2555_v0  ;;  %v2041_v5 = vpop.f32.mrb[13].mxu1 }
 0x55e   :  { %2453 = vmatpush3.bf16.msra.mxu0 %v2628_v12  ;;  %v1279_v12 = vld [vmem:[%s3004_s0 + $0x38] sm:$0xff] }
 0x55f   :  { %2454 = vmatprep.subr.bf16.mxu0 %v2555_v0  ;;  %2110 = vmatmul.mubr.f32.vlgmr.msra.gmra.mrb[14].mxu1 %v1279_v12 }
 0x562   :  { %2456 = vmatpush3.bf16.msra.mxu0 %v2636_v18 }
 0x563   :  { %2457 = vmatprep.subr.bf16.mxu0 %v2555_v0 }
 0x566   :  { %2459 = vmatpush3.bf16.msra.mxu0 %v2647_v25 }
 0x567   :  { %2460 = vmatprep.subr.bf16.mxu0 %v2555_v0 }
 0x56a   :  { %2462 = vmatpush3.bf16.msra.mxu0 %v2658_v31 }
 0x56b   :  { %2463 = vmatprep.subr.bf16.mxu0 %v2555_v0 }
 0x56e   :  { %2465 = vmatpush3.bf16.msra.mxu0 %v2666_v37 }
 0x56f   :  { %2466 = vmatprep.subr.bf16.mxu0 %v2555_v0 }
 0x572   :  { %2468 = vmatpush3.bf16.msra.mxu0 %v2674_v43 }
 0x573   :  { %2469 = vmatprep.subr.bf16.mxu0 %v2555_v0 }
 0x576   :  { %2471 = vmatpush3.bf16.msra.mxu0 %v2682_v49 }
 0x62c   :  { %v1034_v18 = vpop.f32.mrb[12].mxu0 }
 0x62d   :  { %v1105_v25 = vadd.f32 %v1104_v1, %v1034_v18  ;;  %v2006_v31 = vpop.f32.mrb[13].mxu0 }
 0x62f   :  { %v1108_v32 = vadd.f32 %v2756_v54, %v1105_v25 }
 0x631   :  { %1278 = vst [vmem:[%s3009_s5 + $0x38] sm:$0xff] %v1108_v32  ;;  %2075 = vmatmul.mubr.f32.vlgmr.msra.gmra.mrb[14].mxu0 %v1108_v32 }
 0x632   :  { %v1249_v0 = vpop.f32.mrb[14].mxu1 }
 0x633   :  { %v2111_v37 = vpop.f32.mrb[15].mxu1 }
 0x704   :  { %v1179_v38 = vpop.f32.mrb[14].mxu0 }
 0x705   :  { %v1250_v41 = vadd.f32 %v1249_v0, %v1179_v38  ;;  %v2076_v42 = vpop.f32.mrb[15].mxu0 }
 0x707   :  { %v1253_v43 = vadd.f32 %v2756_v54, %v1250_v41 }
 0x709   :  { %1254 = vst [vmem:[%s3010_s6] sm:$0xff] %v1253_v43 }
 0x70a   :  { %1263 = vsyncpa [#allocation3], 1 }
 0x70b   :  { %1264 = vsyncpa [#allocation5], 1 }

</bundles_post_ra>
